<compile_context>
chip_gen: v7x
topology: tpu7x:2x2x1
jax: 0.10.0
libtpu: 0.0.40
codegen_flags: <defaults>
</compile_context>

<pallas_src>
import math
import jax
import jax.numpy as jnp
from jax.experimental import pallas as pl
from jax.experimental.pallas import tpu as pltpu

# ---------------- model hyper-parameters (small, synthetic) ----------------
B = 2          # batch
C = 3          # image channels
IMG = 16       # image height = width
PATCH = 8      # patch size -> 2x2 grid of patches
GRID = IMG // PATCH
NP = GRID * GRID          # number of patches (4)
P = C * PATCH * PATCH     # flattened patch length (192)
N = NP + 1                # tokens incl. class token (5)
NPAD = 8                  # tokens padded to a full sublane group
T = B * NPAD              # all tokens of the whole batch (16 rows)
D = 32                    # transformer width
NUM_HEADS = 2
HD = D // NUM_HEADS
NUM_LAYERS = 2
MLP = 4 * D               # 128
E = 16                    # output embedding dim (proj)
EPAD = 128                # lane-dense padded embedding dim
LN_EPS = 1e-5
NEG = -1e9                # additive mask value

# ---------------- packed "small parameter" layout (row offsets) ----------------
R_TOK = 0                              # [T, D]   cls+pos rows, tiled over batch
R_LNPRE = R_TOK + T                    # 2 rows   ln_pre gamma / beta
R_LNPOST = R_LNPRE + 2                 # 2 rows   ln_post gamma / beta
R_LAYER = R_LNPOST + 2                 # NUM_LAYERS * 8 rows
LAYER_ROWS = 8                         # ln1_g, ln1_b, qkv_b, outp_b, ln2_g, ln2_b, fc1_b, fc2_b
R_MASK = R_LAYER + NUM_LAYERS * LAYER_ROWS   # [T, T] additive attention bias
R_PROJ = R_MASK + T                    # [D, EPAD] projection (lane-padded with zeros)
SROWS = ((R_PROJ + D + 7) // 8) * 8    # pad row count to a multiple of 8
SCOLS = 128


def _layernorm(x, g, b, eps=LN_EPS):
    mu = jnp.mean(x, axis=-1, keepdims=True)
    var = jnp.mean((x - mu) ** 2, axis=-1, keepdims=True)
    return (x - mu) * jax.lax.rsqrt(var + eps) * g + b


def _dot_nt(a, b):
    """a[m,k] contracted with b[n,k] on the last dims -> [m,n] (no transpose op)."""
    return jax.lax.dot_general(a, b, (((1,), (1,)), ((), ())),
                               preferred_element_type=jnp.float32)


def clip_vit_kernel(patches_ref, conv_w_ref, qkv_w_ref, outp_w_ref,
                    fc1_w_ref, fc2_w_ref, small_ref, out_ref):
    bf16 = jnp.bfloat16
    f32 = jnp.float32

    # ---- packed small parameters (all static offsets) ----
    tok = small_ref[R_TOK:R_TOK + T, 0:D]                    # [T, D]
    lnpre_g = small_ref[R_LNPRE:R_LNPRE + 1, 0:D]
    lnpre_b = small_ref[R_LNPRE + 1:R_LNPRE + 2, 0:D]
    lnpost_g = small_ref[R_LNPOST:R_LNPOST + 1, 0:D]
    lnpost_b = small_ref[R_LNPOST + 1:R_LNPOST + 2, 0:D]
    mbias = small_ref[R_MASK:R_MASK + T, 0:T]                # [T, T] 0 / -1e9
    proj = small_ref[R_PROJ:R_PROJ + D, :]                   # [D, EPAD], cols >= E are 0

    # ---- patch embedding: one [B*NPAD, P] @ [P, D] matmul (conv1, bias=False) ----
    x = jnp.dot(patches_ref[...], conv_w_ref[...],
                preferred_element_type=f32)                  # [T, D] f32
    # class token + positional embedding; padded rows stay zero
    x = x + tok
    x = _layernorm(x, lnpre_g, lnpre_b)

    scale = 1.0 / math.sqrt(HD)

    # ---- residual attention blocks ----
    for l in range(NUM_LAYERS):
        base = R_LAYER + l * LAYER_ROWS
        ln1_g = small_ref[base + 0:base + 1, 0:D]
        ln1_b = small_ref[base + 1:base + 2, 0:D]
        qkv_b = small_ref[base + 2:base + 3, 0:3 * D]
        outp_b = small_ref[base + 3:base + 4, 0:D]
        ln2_g = small_ref[base + 4:base + 5, 0:D]
        ln2_b = small_ref[base + 5:base + 6, 0:D]
        fc1_b = small_ref[base + 6:base + 7, 0:MLP]
        fc2_b = small_ref[base + 7:base + 8, 0:D]
        w_qkv = qkv_w_ref[l]          # [D, 3D]  bf16
        w_out = outp_w_ref[l]         # [D, D]   bf16
        w_fc1 = fc1_w_ref[l]          # [D, MLP] bf16
        w_fc2 = fc2_w_ref[l]          # [MLP, D] bf16

        # --- multi-head self-attention (heads = lane slices, no concat/transpose) ---
        x_ln = _layernorm(x, ln1_g, ln1_b).astype(bf16)
        qkv = jnp.dot(x_ln, w_qkv, preferred_element_type=f32) + qkv_b   # [T, 3D] f32

        attn = None
        for h in range(NUM_HEADS):
            lo, hi = h * HD, (h + 1) * HD
            qh = qkv[:, lo:hi].astype(bf16)
            kh = qkv[:, D + lo:D + hi].astype(bf16)
            vh = qkv[:, 2 * D + lo:2 * D + hi].astype(bf16)
            # whole-batch scores; cross-image and padded keys masked via mbias
            s = _dot_nt(qh, kh) * scale + mbias                          # [T, T] f32
            s = s - jnp.max(s, axis=-1, keepdims=True)
            p = jnp.exp(s)
            p = p * pl.reciprocal(jnp.sum(p, axis=-1, keepdims=True), approx=True)
            head = jnp.dot(p.astype(bf16), vh, preferred_element_type=f32)  # [T, HD]
            # fold the output projection per head -> no lane-axis concat needed
            contrib = jnp.dot(head.astype(bf16), w_out[lo:hi, :],
                              preferred_element_type=f32)                    # [T, D]
            attn = contrib if attn is None else attn + contrib
        x = x + attn + outp_b

        # --- MLP with QuickGELU (x * sigmoid(1.702 x)) ---
        x_ln = _layernorm(x, ln2_g, ln2_b).astype(bf16)
        h1 = jnp.dot(x_ln, w_fc1, preferred_element_type=f32) + fc1_b    # [T, MLP]
        h1 = h1 * jax.nn.sigmoid(1.702 * h1)
        h2 = jnp.dot(h1.astype(bf16), w_fc2, preferred_element_type=f32) + fc2_b
        x = x + h2

    # ---- ln_post + projection + L2 normalize (row-wise; wrapper keeps cls rows) ----
    xc = _layernorm(x, lnpost_g, lnpost_b)
    emb = jnp.dot(xc.astype(bf16), proj.astype(bf16),
                  preferred_element_type=f32)                            # [T, EPAD]
    emb = emb * jax.lax.rsqrt(jnp.sum(emb * emb, axis=-1, keepdims=True) + 1e-12)
    out_ref[...] = emb


def _full_spec(shape):
    """Full-array block; same block for the single grid point."""
    rank = len(shape)
    return pl.BlockSpec(shape, lambda i, _r=rank: (0,) * _r)


def _pack_params(params):
    """bf16-cast the matmul weights and pack all tiny params into one f32 array."""
    conv_w = params["conv_w"].astype(jnp.bfloat16)
    qkv_w = params["qkv_w"].astype(jnp.bfloat16)
    outp_w = params["outp_w"].astype(jnp.bfloat16)
    fc1_w = params["fc1_w"].astype(jnp.bfloat16)
    fc2_w = params["fc2_w"].astype(jnp.bfloat16)

    # per-image token init: row 0 = cls + pos[0], rows 1..N-1 = pos, rest zero
    tok = jnp.zeros((NPAD, D), jnp.float32)
    tok = tok.at[0].set(params["cls"][0] + params["pos"][0])
    tok = tok.at[1:N].set(params["pos"][1:N])
    tok_full = jnp.tile(tok, (B, 1))                                    # [T, D]

    # additive attention bias: same-image AND valid-token keys -> 0, else -1e9
    qi = jnp.arange(T)[:, None] // NPAD
    kj = jnp.arange(T)[None, :]
    allowed = (qi == (kj // NPAD)) & ((kj % NPAD) < N)
    mbias = jnp.where(allowed, 0.0, NEG).astype(jnp.float32)            # [T, T]

    small = jnp.zeros((SROWS, SCOLS), jnp.float32)
    small = small.at[R_TOK:R_TOK + T, 0:D].set(tok_full)
    small = small.at[R_LNPRE, 0:D].set(params["lnpre_g"][0])
    small = small.at[R_LNPRE + 1, 0:D].set(params["lnpre_b"][0])
    small = small.at[R_LNPOST, 0:D].set(params["lnpost_g"][0])
    small = small.at[R_LNPOST + 1, 0:D].set(params["lnpost_b"][0])
    for l in range(NUM_LAYERS):
        base = R_LAYER + l * LAYER_ROWS
        small = small.at[base + 0, 0:D].set(params["ln1_g"][l, 0])
        small = small.at[base + 1, 0:D].set(params["ln1_b"][l, 0])
        small = small.at[base + 2, 0:3 * D].set(params["qkv_b"][l, 0])
        small = small.at[base + 3, 0:D].set(params["outp_b"][l, 0])
        small = small.at[base + 4, 0:D].set(params["ln2_g"][l, 0])
        small = small.at[base + 5, 0:D].set(params["ln2_b"][l, 0])
        small = small.at[base + 6, 0:MLP].set(params["fc1_b"][l, 0])
        small = small.at[base + 7, 0:D].set(params["fc2_b"][l, 0])
    small = small.at[R_MASK:R_MASK + T, 0:T].set(mbias)
    small = small.at[R_PROJ:R_PROJ + D, 0:E].set(params["proj"])
    return conv_w, qkv_w, outp_w, fc1_w, fc2_w, small


def clip_image_encode(img, params):
    """img: [B, C, H, W] float32 (NCHW). Returns [B, E] float32, L2-normalized."""
    b, c, hgt, wdt = img.shape
    assert (b, c, hgt, wdt) == (B, C, IMG, IMG)

    # NCHW -> [B, NP, C*ph*pw] patch rows, then pad to NPAD tokens per image
    x = img.reshape(B, C, GRID, PATCH, GRID, PATCH)
    x = x.transpose(0, 2, 4, 1, 3, 5).reshape(B, NP, P)
    patches_pad = jnp.zeros((B, NPAD, P), img.dtype).at[:, 1:NP + 1, :].set(x)
    patches = patches_pad.reshape(T, P).astype(jnp.bfloat16)

    conv_w, qkv_w, outp_w, fc1_w, fc2_w, small = _pack_params(params)
    operands = [patches, conv_w, qkv_w, outp_w, fc1_w, fc2_w, small]

    out = pl.pallas_call(
        clip_vit_kernel,
        out_shape=jax.ShapeDtypeStruct((T, EPAD), jnp.float32),
        grid_spec=pltpu.PrefetchScalarGridSpec(
            num_scalar_prefetch=0,
            grid=(1,),                               # grid collapsed: whole batch in one step
            in_specs=[_full_spec(o.shape) for o in operands],
            out_specs=_full_spec((T, EPAD)),
        ),
        compiler_params=pltpu.CompilerParams(
            dimension_semantics=("arbitrary",)),
    )(*operands)

    # class-token row of each image, first E lanes
    return out.reshape(B, NPAD, EPAD)[:, 0, :E]


# ---------------- deterministic synthetic parameter init ----------------
def init_params(key):
    ks = jax.random.split(key, 16)

    def nrm(k, shape, std=0.05):
        return (std * jax.random.normal(k, shape)).astype(jnp.float32)

    return {
        "conv_w": nrm(ks[0], (P, D)),                   # conv1 weight, flattened & transposed
        "cls": nrm(ks[1], (1, D)),                      # class embedding
        "pos": nrm(ks[2], (N, D)),                      # positional embedding
        "lnpre_g": jnp.ones((1, D), jnp.float32),
        "lnpre_b": jnp.zeros((1, D), jnp.float32),
        "ln1_g": jnp.ones((NUM_LAYERS, 1, D), jnp.float32),
        "ln1_b": jnp.zeros((NUM_LAYERS, 1, D), jnp.float32),
        "qkv_w": nrm(ks[3], (NUM_LAYERS, D, 3 * D)),
        "qkv_b": nrm(ks[4], (NUM_LAYERS, 1, 3 * D), 0.01),
        "outp_w": nrm(ks[5], (NUM_LAYERS, D, D)),
        "outp_b": nrm(ks[6], (NUM_LAYERS, 1, D), 0.01),
        "ln2_g": jnp.ones((NUM_LAYERS, 1, D), jnp.float32),
        "ln2_b": jnp.zeros((NUM_LAYERS, 1, D), jnp.float32),
        "fc1_w": nrm(ks[7], (NUM_LAYERS, D, MLP)),
        "fc1_b": nrm(ks[8], (NUM_LAYERS, 1, MLP), 0.01),
        "fc2_w": nrm(ks[9], (NUM_LAYERS, MLP, D)),
        "fc2_b": nrm(ks[10], (NUM_LAYERS, 1, D), 0.01),
        "lnpost_g": jnp.ones((1, D), jnp.float32),
        "lnpost_b": jnp.zeros((1, D), jnp.float32),
        "proj": nrm(ks[11], (D, E)),
    }


# -------- pure-JAX reference (mirrors bf16-at-matmul-boundary math) --------
def reference_encode(img, p):
    bf16, f32 = jnp.bfloat16, jnp.float32
    x = img.reshape(B, C, GRID, PATCH, GRID, PATCH)
    x = x.transpose(0, 2, 4, 1, 3, 5).reshape(B, NP, P)
    x = jnp.einsum("bnp,pd->bnd", x.astype(bf16), p["conv_w"].astype(bf16),
                   preferred_element_type=f32)
    cls = jnp.broadcast_to(p["cls"][None], (B, 1, D))
    x = jnp.concatenate([cls, x], axis=1) + p["pos"][None]
    x = _layernorm(x, p["lnpre_g"], p["lnpre_b"])
    for l in range(NUM_LAYERS):
        xl = _layernorm(x, p["ln1_g"][l], p["ln1_b"][l]).astype(bf16)
        qkv = jnp.einsum("bnd,de->bne", xl, p["qkv_w"][l].astype(bf16),
                         preferred_element_type=f32) + p["qkv_b"][l]
        q, k, v = qkv[..., :D], qkv[..., D:2 * D], qkv[..., 2 * D:]
        outs = []
        for h in range(NUM_HEADS):
            qh, kh, vh = (t[..., h * HD:(h + 1) * HD].astype(bf16) for t in (q, k, v))
            s = jnp.einsum("bqd,bkd->bqk", qh, kh,
                           preferred_element_type=f32) / math.sqrt(HD)
            pr = jax.nn.softmax(s, axis=-1)
            outs.append(jnp.einsum("bqk,bkd->bqd", pr.astype(bf16), vh,
                                   preferred_element_type=f32))
        a = jnp.concatenate(outs, axis=-1)
        a = jnp.einsum("bnd,de->bne", a.astype(bf16), p["outp_w"][l].astype(bf16),
                       preferred_element_type=f32) + p["outp_b"][l]
        x = x + a
        xl = _layernorm(x, p["ln2_g"][l], p["ln2_b"][l]).astype(bf16)
        h1 = jnp.einsum("bnd,de->bne", xl, p["fc1_w"][l].astype(bf16),
                        preferred_element_type=f32) + p["fc1_b"][l]
        h1 = h1 * jax.nn.sigmoid(1.702 * h1)
        x = x + jnp.einsum("bnd,de->bne", h1.astype(bf16), p["fc2_w"][l].astype(bf16),
                           preferred_element_type=f32) + p["fc2_b"][l]
    cls_tok = _layernorm(x[:, 0, :], p["lnpost_g"], p["lnpost_b"])
    emb = jnp.einsum("bd,de->be", cls_tok.astype(bf16), p["proj"].astype(bf16),
                     preferred_element_type=f32)
    return emb / jnp.linalg.norm(emb, axis=-1, keepdims=True)


if __name__ == "__main__":
    key = jax.random.PRNGKey(0)
    k_img, k_par = jax.random.split(key)
    img = jax.random.normal(k_img, (B, C, IMG, IMG), dtype=jnp.float32)
    params = init_params(k_par)

    emb = clip_image_encode(img, params)
    emb = jax.block_until_ready(emb)

    assert emb.shape == (B, E) and emb.dtype == jnp.float32
    assert bool(jnp.all(jnp.isfinite(emb)))
    # embeddings are L2-normalized
    norms = jnp.linalg.norm(emb, axis=-1)
    assert bool(jnp.allclose(norms, 1.0, atol=1e-3))
    # compare against a pure-JAX reference using the same bf16 matmul boundaries
    ref = jax.block_until_ready(reference_encode(img, params))
    assert bool(jnp.allclose(emb, ref, atol=2e-2, rtol=2e-2))

    print("KERNEL_OK")
</pallas_src>

<mosaic_0001>
module attributes {stable_mosaic.version = 11 : i64} {
  func.func @clip_vit_kernel(%arg0: i32, %arg1: memref<16x192xbf16, #tpu.memory_space<vmem>>, %arg2: memref<192x32xbf16, #tpu.memory_space<vmem>>, %arg3: memref<2x32x96xbf16, #tpu.memory_space<vmem>>, %arg4: memref<2x32x32xbf16, #tpu.memory_space<vmem>>, %arg5: memref<2x32x128xbf16, #tpu.memory_space<vmem>>, %arg6: memref<2x128x32xbf16, #tpu.memory_space<vmem>>, %arg7: memref<88x128xf32, #tpu.memory_space<vmem>>, %arg8: memref<16x128xf32, #tpu.memory_space<vmem>>) attributes {dimension_semantics = [#tpu.dimension_semantics<arbitrary>], iteration_bounds = array<i64: 1>, scalar_prefetch = 0 : i64, scratch_operands = 0 : i64, tpu.core_type = #tpu.core_type<tc>, window_params = [{pipeline_mode = #tpu.pipeline_mode<synchronous>, transform_indices = @transform_0, window_bounds = array<i64: 16, 192>}, {pipeline_mode = #tpu.pipeline_mode<synchronous>, transform_indices = @transform_1, window_bounds = array<i64: 192, 32>}, {pipeline_mode = #tpu.pipeline_mode<synchronous>, transform_indices = @transform_2, window_bounds = array<i64: 2, 32, 96>}, {pipeline_mode = #tpu.pipeline_mode<synchronous>, transform_indices = @transform_3, window_bounds = array<i64: 2, 32, 32>}, {pipeline_mode = #tpu.pipeline_mode<synchronous>, transform_indices = @transform_4, window_bounds = array<i64: 2, 32, 128>}, {pipeline_mode = #tpu.pipeline_mode<synchronous>, transform_indices = @transform_5, window_bounds = array<i64: 2, 128, 32>}, {pipeline_mode = #tpu.pipeline_mode<synchronous>, transform_indices = @transform_6, window_bounds = array<i64: 88, 128>}, {pipeline_mode = #tpu.pipeline_mode<synchronous>, transform_indices = @transform_7, window_bounds = array<i64: 16, 128>}]} {
    %c0 = arith.constant 0 : index
    %c0_0 = arith.constant 0 : index
    %0 = vector.load %arg7[%c0, %c0_0] : memref<88x128xf32, #tpu.memory_space<vmem>>, vector<16x32xf32>
    %c16 = arith.constant 16 : index
    %c0_1 = arith.constant 0 : index
    %1 = vector.load %arg7[%c16, %c0_1] : memref<88x128xf32, #tpu.memory_space<vmem>>, vector<1x32xf32>
    %c17 = arith.constant 17 : index
    %c0_2 = arith.constant 0 : index
    %2 = vector.load %arg7[%c17, %c0_2] : memref<88x128xf32, #tpu.memory_space<vmem>>, vector<1x32xf32>
    %c18 = arith.constant 18 : index
    %c0_3 = arith.constant 0 : index
    %3 = vector.load %arg7[%c18, %c0_3] : memref<88x128xf32, #tpu.memory_space<vmem>>, vector<1x32xf32>
    %c19 = arith.constant 19 : index
    %c0_4 = arith.constant 0 : index
    %4 = vector.load %arg7[%c19, %c0_4] : memref<88x128xf32, #tpu.memory_space<vmem>>, vector<1x32xf32>
    %c36 = arith.constant 36 : index
    %c0_5 = arith.constant 0 : index
    %5 = vector.load %arg7[%c36, %c0_5] : memref<88x128xf32, #tpu.memory_space<vmem>>, vector<16x16xf32>
    %c52 = arith.constant 52 : index
    %c0_6 = arith.constant 0 : index
    %6 = vector.load %arg7[%c52, %c0_6] : memref<88x128xf32, #tpu.memory_space<vmem>>, vector<32x128xf32>
    %c0_7 = arith.constant 0 : index
    %c0_8 = arith.constant 0 : index
    %7 = vector.load %arg1[%c0_7, %c0_8] : memref<16x192xbf16, #tpu.memory_space<vmem>>, vector<16x192xbf16>
    %c0_9 = arith.constant 0 : index
    %c0_10 = arith.constant 0 : index
    %8 = vector.load %arg2[%c0_9, %c0_10] : memref<192x32xbf16, #tpu.memory_space<vmem>>, vector<192x32xbf16>
    %cst = arith.constant dense<0.000000e+00> : vector<16x32xf32>
    %9 = tpu.matmul %7, %8, %cst {dimension_numbers = #tpu.dot_dimension_numbers<[1], [0], [0], [1], [0, 0, 1, 1], [], []>} : vector<16x192xbf16>, vector<192x32xbf16>, vector<16x32xf32> -> vector<16x32xf32>
    %10 = arith.addf %9, %0 : vector<16x32xf32>
    %cst_11 = arith.constant dense<0.000000e+00> : vector<16xf32>
    %11 = vector.multi_reduction <add>, %10, %cst_11 [1] : vector<16x32xf32> to vector<16xf32>
    %12 = vector.shape_cast %11 : vector<16xf32> to vector<16x1xf32>
    %cst_12 = arith.constant 3.200000e+01 : f32
    %13 = vector.broadcast %cst_12 : f32 to vector<16x1xf32>
    %14 = arith.divf %12, %13 : vector<16x1xf32>
    %15 = vector.broadcast %14 : vector<16x1xf32> to vector<16x32xf32>
    %16 = arith.subf %10, %15 : vector<16x32xf32>
    %17 = arith.mulf %16, %16 : vector<16x32xf32>
    %cst_13 = arith.constant dense<0.000000e+00> : vector<16xf32>
    %18 = vector.multi_reduction <add>, %17, %cst_13 [1] : vector<16x32xf32> to vector<16xf32>
    %19 = vector.shape_cast %18 : vector<16xf32> to vector<16x1xf32>
    %cst_14 = arith.constant 3.200000e+01 : f32
    %20 = vector.broadcast %cst_14 : f32 to vector<16x1xf32>
    %21 = arith.divf %19, %20 : vector<16x1xf32>
    %22 = vector.broadcast %14 : vector<16x1xf32> to vector<16x32xf32>
    %23 = arith.subf %10, %22 : vector<16x32xf32>
    %cst_15 = arith.constant 9.99999974E-6 : f32
    %24 = vector.broadcast %cst_15 : f32 to vector<16x1xf32>
    %25 = arith.addf %21, %24 : vector<16x1xf32>
    %26 = math.rsqrt %25 : vector<16x1xf32>
    %27 = vector.broadcast %26 : vector<16x1xf32> to vector<16x32xf32>
    %28 = arith.mulf %23, %27 : vector<16x32xf32>
    %29 = vector.broadcast %1 : vector<1x32xf32> to vector<16x32xf32>
    %30 = arith.mulf %28, %29 : vector<16x32xf32>
    %31 = vector.broadcast %2 : vector<1x32xf32> to vector<16x32xf32>
    %32 = arith.addf %30, %31 : vector<16x32xf32>
    %c20 = arith.constant 20 : index
    %c0_16 = arith.constant 0 : index
    %33 = vector.load %arg7[%c20, %c0_16] : memref<88x128xf32, #tpu.memory_space<vmem>>, vector<1x32xf32>
    %c21 = arith.constant 21 : index
    %c0_17 = arith.constant 0 : index
    %34 = vector.load %arg7[%c21, %c0_17] : memref<88x128xf32, #tpu.memory_space<vmem>>, vector<1x32xf32>
    %c22 = arith.constant 22 : index
    %c0_18 = arith.constant 0 : index
    %35 = vector.load %arg7[%c22, %c0_18] : memref<88x128xf32, #tpu.memory_space<vmem>>, vector<1x96xf32>
    %c23 = arith.constant 23 : index
    %c0_19 = arith.constant 0 : index
    %36 = vector.load %arg7[%c23, %c0_19] : memref<88x128xf32, #tpu.memory_space<vmem>>, vector<1x32xf32>
    %c24 = arith.constant 24 : index
    %c0_20 = arith.constant 0 : index
    %37 = vector.load %arg7[%c24, %c0_20] : memref<88x128xf32, #tpu.memory_space<vmem>>, vector<1x32xf32>
    %c25 = arith.constant 25 : index
    %c0_21 = arith.constant 0 : index
    %38 = vector.load %arg7[%c25, %c0_21] : memref<88x128xf32, #tpu.memory_space<vmem>>, vector<1x32xf32>
    %c26 = arith.constant 26 : index
    %c0_22 = arith.constant 0 : index
    %39 = vector.load %arg7[%c26, %c0_22] : memref<88x128xf32, #tpu.memory_space<vmem>>, vector<1x128xf32>
    %c27 = arith.constant 27 : index
    %c0_23 = arith.constant 0 : index
    %40 = vector.load %arg7[%c27, %c0_23] : memref<88x128xf32, #tpu.memory_space<vmem>>, vector<1x32xf32>
    %c0_24 = arith.constant 0 : index
    %c0_25 = arith.constant 0 : index
    %c0_26 = arith.constant 0 : index
    %41 = vector.load %arg3[%c0_24, %c0_25, %c0_26] : memref<2x32x96xbf16, #tpu.memory_space<vmem>>, vector<1x32x96xbf16>
    %42 = vector.shape_cast %41 : vector<1x32x96xbf16> to vector<32x96xbf16>
    %c0_27 = arith.constant 0 : index
    %c0_28 = arith.constant 0 : index
    %c0_29 = arith.constant 0 : index
    %43 = vector.load %arg4[%c0_27, %c0_28, %c0_29] : memref<2x32x32xbf16, #tpu.memory_space<vmem>>, vector<1x32x32xbf16>
    %44 = vector.shape_cast %43 : vector<1x32x32xbf16> to vector<32x32xbf16>
    %c0_30 = arith.constant 0 : index
    %c0_31 = arith.constant 0 : index
    %c0_32 = arith.constant 0 : index
    %45 = vector.load %arg5[%c0_30, %c0_31, %c0_32] : memref<2x32x128xbf16, #tpu.memory_space<vmem>>, vector<1x32x128xbf16>
    %46 = vector.shape_cast %45 : vector<1x32x128xbf16> to vector<32x128xbf16>
    %c0_33 = arith.constant 0 : index
    %c0_34 = arith.constant 0 : index
    %c0_35 = arith.constant 0 : index
    %47 = vector.load %arg6[%c0_33, %c0_34, %c0_35] : memref<2x128x32xbf16, #tpu.memory_space<vmem>>, vector<1x128x32xbf16>
    %48 = vector.shape_cast %47 : vector<1x128x32xbf16> to vector<128x32xbf16>
    %cst_36 = arith.constant dense<0.000000e+00> : vector<16xf32>
    %49 = vector.multi_reduction <add>, %32, %cst_36 [1] : vector<16x32xf32> to vector<16xf32>
    %50 = vector.shape_cast %49 : vector<16xf32> to vector<16x1xf32>
    %cst_37 = arith.constant 3.200000e+01 : f32
    %51 = vector.broadcast %cst_37 : f32 to vector<16x1xf32>
    %52 = arith.divf %50, %51 : vector<16x1xf32>
    %53 = vector.broadcast %52 : vector<16x1xf32> to vector<16x32xf32>
    %54 = arith.subf %32, %53 : vector<16x32xf32>
    %55 = arith.mulf %54, %54 : vector<16x32xf32>
    %cst_38 = arith.constant dense<0.000000e+00> : vector<16xf32>
    %56 = vector.multi_reduction <add>, %55, %cst_38 [1] : vector<16x32xf32> to vector<16xf32>
    %57 = vector.shape_cast %56 : vector<16xf32> to vector<16x1xf32>
    %cst_39 = arith.constant 3.200000e+01 : f32
    %58 = vector.broadcast %cst_39 : f32 to vector<16x1xf32>
    %59 = arith.divf %57, %58 : vector<16x1xf32>
    %60 = vector.broadcast %52 : vector<16x1xf32> to vector<16x32xf32>
    %61 = arith.subf %32, %60 : vector<16x32xf32>
    %cst_40 = arith.constant 9.99999974E-6 : f32
    %62 = vector.broadcast %cst_40 : f32 to vector<16x1xf32>
    %63 = arith.addf %59, %62 : vector<16x1xf32>
    %64 = math.rsqrt %63 : vector<16x1xf32>
    %65 = vector.broadcast %64 : vector<16x1xf32> to vector<16x32xf32>
    %66 = arith.mulf %61, %65 : vector<16x32xf32>
    %67 = vector.broadcast %33 : vector<1x32xf32> to vector<16x32xf32>
    %68 = arith.mulf %66, %67 : vector<16x32xf32>
    %69 = vector.broadcast %34 : vector<1x32xf32> to vector<16x32xf32>
    %70 = arith.addf %68, %69 : vector<16x32xf32>
    %71 = arith.truncf %70 : vector<16x32xf32> to vector<16x32xbf16>
    %cst_41 = arith.constant dense<0.000000e+00> : vector<16x96xf32>
    %72 = tpu.matmul %71, %42, %cst_41 {dimension_numbers = #tpu.dot_dimension_numbers<[1], [0], [0], [1], [0, 0, 1, 1], [], []>} : vector<16x32xbf16>, vector<32x96xbf16>, vector<16x96xf32> -> vector<16x96xf32>
    %73 = vector.broadcast %35 : vector<1x96xf32> to vector<16x96xf32>
    %74 = arith.addf %72, %73 : vector<16x96xf32>
    %75 = vector.extract_strided_slice %74 {offsets = [0, 0], sizes = [16, 16], strides = [1, 1]} : vector<16x96xf32> to vector<16x16xf32>
    %76 = arith.truncf %75 : vector<16x16xf32> to vector<16x16xbf16>
    %77 = vector.extract_strided_slice %74 {offsets = [0, 32], sizes = [16, 16], strides = [1, 1]} : vector<16x96xf32> to vector<16x16xf32>
    %78 = arith.truncf %77 : vector<16x16xf32> to vector<16x16xbf16>
    %79 = vector.extract_strided_slice %74 {offsets = [0, 64], sizes = [16, 16], strides = [1, 1]} : vector<16x96xf32> to vector<16x16xf32>
    %80 = arith.truncf %79 : vector<16x16xf32> to vector<16x16xbf16>
    %cst_42 = arith.constant dense<0.000000e+00> : vector<16x16xf32>
    %81 = tpu.matmul %76, %78, %cst_42 {dimension_numbers = #tpu.dot_dimension_numbers<[1], [1], [0], [0], [0, 0, 1, 0], [], []>} : vector<16x16xbf16>, vector<16x16xbf16>, vector<16x16xf32> -> vector<16x16xf32>
    %cst_43 = arith.constant 2.500000e-01 : f32
    %82 = vector.broadcast %cst_43 : f32 to vector<16x16xf32>
    %83 = arith.mulf %81, %82 : vector<16x16xf32>
    %84 = arith.addf %83, %5 : vector<16x16xf32>
    %cst_44 = arith.constant dense<0xFF800000> : vector<16xf32>
    %85 = vector.multi_reduction <maximumf>, %84, %cst_44 [1] : vector<16x16xf32> to vector<16xf32>
    %86 = vector.shape_cast %85 : vector<16xf32> to vector<16x1xf32>
    %87 = vector.broadcast %86 : vector<16x1xf32> to vector<16x16xf32>
    %88 = arith.subf %84, %87 : vector<16x16xf32>
    %89 = math.exp %88 : vector<16x16xf32>
    %cst_45 = arith.constant dense<0.000000e+00> : vector<16xf32>
    %90 = vector.multi_reduction <add>, %89, %cst_45 [1] : vector<16x16xf32> to vector<16xf32>
    %91 = vector.shape_cast %90 : vector<16xf32> to vector<16x1xf32>
    %92 = tpu.reciprocal %91 {approx = true} : vector<16x1xf32> -> vector<16x1xf32>
    %93 = vector.broadcast %92 : vector<16x1xf32> to vector<16x16xf32>
    %94 = arith.mulf %89, %93 : vector<16x16xf32>
    %95 = arith.truncf %94 : vector<16x16xf32> to vector<16x16xbf16>
    %cst_46 = arith.constant dense<0.000000e+00> : vector<16x16xf32>
    %96 = tpu.matmul %95, %80, %cst_46 {dimension_numbers = #tpu.dot_dimension_numbers<[1], [0], [0], [1], [0, 0, 1, 1], [], []>} : vector<16x16xbf16>, vector<16x16xbf16>, vector<16x16xf32> -> vector<16x16xf32>
    %97 = arith.truncf %96 : vector<16x16xf32> to vector<16x16xbf16>
    %98 = vector.extract_strided_slice %44 {offsets = [0, 0], sizes = [16, 32], strides = [1, 1]} : vector<32x32xbf16> to vector<16x32xbf16>
    %cst_47 = arith.constant dense<0.000000e+00> : vector<16x32xf32>
    %99 = tpu.matmul %97, %98, %cst_47 {dimension_numbers = #tpu.dot_dimension_numbers<[1], [0], [0], [1], [0, 0, 1, 1], [], []>} : vector<16x16xbf16>, vector<16x32xbf16>, vector<16x32xf32> -> vector<16x32xf32>
    %100 = vector.extract_strided_slice %74 {offsets = [0, 16], sizes = [16, 16], strides = [1, 1]} : vector<16x96xf32> to vector<16x16xf32>
    %101 = arith.truncf %100 : vector<16x16xf32> to vector<16x16xbf16>
    %102 = vector.extract_strided_slice %74 {offsets = [0, 48], sizes = [16, 16], strides = [1, 1]} : vector<16x96xf32> to vector<16x16xf32>
    %103 = arith.truncf %102 : vector<16x16xf32> to vector<16x16xbf16>
    %104 = vector.extract_strided_slice %74 {offsets = [0, 80], sizes = [16, 16], strides = [1, 1]} : vector<16x96xf32> to vector<16x16xf32>
    %105 = arith.truncf %104 : vector<16x16xf32> to vector<16x16xbf16>
    %cst_48 = arith.constant dense<0.000000e+00> : vector<16x16xf32>
    %106 = tpu.matmul %101, %103, %cst_48 {dimension_numbers = #tpu.dot_dimension_numbers<[1], [1], [0], [0], [0, 0, 1, 0], [], []>} : vector<16x16xbf16>, vector<16x16xbf16>, vector<16x16xf32> -> vector<16x16xf32>
    %cst_49 = arith.constant 2.500000e-01 : f32
    %107 = vector.broadcast %cst_49 : f32 to vector<16x16xf32>
    %108 = arith.mulf %106, %107 : vector<16x16xf32>
    %109 = arith.addf %108, %5 : vector<16x16xf32>
    %cst_50 = arith.constant dense<0xFF800000> : vector<16xf32>
    %110 = vector.multi_reduction <maximumf>, %109, %cst_50 [1] : vector<16x16xf32> to vector<16xf32>
    %111 = vector.shape_cast %110 : vector<16xf32> to vector<16x1xf32>
    %112 = vector.broadcast %111 : vector<16x1xf32> to vector<16x16xf32>
    %113 = arith.subf %109, %112 : vector<16x16xf32>
    %114 = math.exp %113 : vector<16x16xf32>
    %cst_51 = arith.constant dense<0.000000e+00> : vector<16xf32>
    %115 = vector.multi_reduction <add>, %114, %cst_51 [1] : vector<16x16xf32> to vector<16xf32>
    %116 = vector.shape_cast %115 : vector<16xf32> to vector<16x1xf32>
    %117 = tpu.reciprocal %116 {approx = true} : vector<16x1xf32> -> vector<16x1xf32>
    %118 = vector.broadcast %117 : vector<16x1xf32> to vector<16x16xf32>
    %119 = arith.mulf %114, %118 : vector<16x16xf32>
    %120 = arith.truncf %119 : vector<16x16xf32> to vector<16x16xbf16>
    %cst_52 = arith.constant dense<0.000000e+00> : vector<16x16xf32>
    %121 = tpu.matmul %120, %105, %cst_52 {dimension_numbers = #tpu.dot_dimension_numbers<[1], [0], [0], [1], [0, 0, 1, 1], [], []>} : vector<16x16xbf16>, vector<16x16xbf16>, vector<16x16xf32> -> vector<16x16xf32>
    %122 = arith.truncf %121 : vector<16x16xf32> to vector<16x16xbf16>
    %123 = vector.extract_strided_slice %44 {offsets = [16, 0], sizes = [16, 32], strides = [1, 1]} : vector<32x32xbf16> to vector<16x32xbf16>
    %cst_53 = arith.constant dense<0.000000e+00> : vector<16x32xf32>
    %124 = tpu.matmul %122, %123, %cst_53 {dimension_numbers = #tpu.dot_dimension_numbers<[1], [0], [0], [1], [0, 0, 1, 1], [], []>} : vector<16x16xbf16>, vector<16x32xbf16>, vector<16x32xf32> -> vector<16x32xf32>
    %125 = arith.addf %99, %124 : vector<16x32xf32>
    %126 = arith.addf %32, %125 : vector<16x32xf32>
    %127 = vector.broadcast %36 : vector<1x32xf32> to vector<16x32xf32>
    %128 = arith.addf %126, %127 : vector<16x32xf32>
    %cst_54 = arith.constant dense<0.000000e+00> : vector<16xf32>
    %129 = vector.multi_reduction <add>, %128, %cst_54 [1] : vector<16x32xf32> to vector<16xf32>
    %130 = vector.shape_cast %129 : vector<16xf32> to vector<16x1xf32>
    %cst_55 = arith.constant 3.200000e+01 : f32
    %131 = vector.broadcast %cst_55 : f32 to vector<16x1xf32>
    %132 = arith.divf %130, %131 : vector<16x1xf32>
    %133 = vector.broadcast %132 : vector<16x1xf32> to vector<16x32xf32>
    %134 = arith.subf %128, %133 : vector<16x32xf32>
    %135 = arith.mulf %134, %134 : vector<16x32xf32>
    %cst_56 = arith.constant dense<0.000000e+00> : vector<16xf32>
    %136 = vector.multi_reduction <add>, %135, %cst_56 [1] : vector<16x32xf32> to vector<16xf32>
    %137 = vector.shape_cast %136 : vector<16xf32> to vector<16x1xf32>
    %cst_57 = arith.constant 3.200000e+01 : f32
    %138 = vector.broadcast %cst_57 : f32 to vector<16x1xf32>
    %139 = arith.divf %137, %138 : vector<16x1xf32>
    %140 = vector.broadcast %132 : vector<16x1xf32> to vector<16x32xf32>
    %141 = arith.subf %128, %140 : vector<16x32xf32>
    %cst_58 = arith.constant 9.99999974E-6 : f32
    %142 = vector.broadcast %cst_58 : f32 to vector<16x1xf32>
    %143 = arith.addf %139, %142 : vector<16x1xf32>
    %144 = math.rsqrt %143 : vector<16x1xf32>
    %145 = vector.broadcast %144 : vector<16x1xf32> to vector<16x32xf32>
    %146 = arith.mulf %141, %145 : vector<16x32xf32>
    %147 = vector.broadcast %37 : vector<1x32xf32> to vector<16x32xf32>
    %148 = arith.mulf %146, %147 : vector<16x32xf32>
    %149 = vector.broadcast %38 : vector<1x32xf32> to vector<16x32xf32>
    %150 = arith.addf %148, %149 : vector<16x32xf32>
    %151 = arith.truncf %150 : vector<16x32xf32> to vector<16x32xbf16>
    %cst_59 = arith.constant dense<0.000000e+00> : vector<16x128xf32>
    %152 = tpu.matmul %151, %46, %cst_59 {dimension_numbers = #tpu.dot_dimension_numbers<[1], [0], [0], [1], [0, 0, 1, 1], [], []>} : vector<16x32xbf16>, vector<32x128xbf16>, vector<16x128xf32> -> vector<16x128xf32>
    %153 = vector.broadcast %39 : vector<1x128xf32> to vector<16x128xf32>
    %154 = arith.addf %152, %153 : vector<16x128xf32>
    %cst_60 = arith.constant 1.702000e+00 : f32
    %155 = vector.broadcast %cst_60 : f32 to vector<16x128xf32>
    %156 = arith.mulf %155, %154 : vector<16x128xf32>
    %157 = arith.negf %156 : vector<16x128xf32>
    %158 = math.exp %157 : vector<16x128xf32>
    %cst_61 = arith.constant 1.000000e+00 : f32
    %159 = vector.broadcast %cst_61 : f32 to vector<16x128xf32>
    %160 = arith.addf %159, %158 : vector<16x128xf32>
    %161 = arith.divf %159, %160 : vector<16x128xf32>
    %162 = arith.mulf %154, %161 : vector<16x128xf32>
    %163 = arith.truncf %162 : vector<16x128xf32> to vector<16x128xbf16>
    %cst_62 = arith.constant dense<0.000000e+00> : vector<16x32xf32>
    %164 = tpu.matmul %163, %48, %cst_62 {dimension_numbers = #tpu.dot_dimension_numbers<[1], [0], [0], [1], [0, 0, 1, 1], [], []>} : vector<16x128xbf16>, vector<128x32xbf16>, vector<16x32xf32> -> vector<16x32xf32>
    %165 = vector.broadcast %40 : vector<1x32xf32> to vector<16x32xf32>
    %166 = arith.addf %164, %165 : vector<16x32xf32>
    %167 = arith.addf %128, %166 : vector<16x32xf32>
    %c28 = arith.constant 28 : index
    %c0_63 = arith.constant 0 : index
    %168 = vector.load %arg7[%c28, %c0_63] : memref<88x128xf32, #tpu.memory_space<vmem>>, vector<1x32xf32>
    %c29 = arith.constant 29 : index
    %c0_64 = arith.constant 0 : index
    %169 = vector.load %arg7[%c29, %c0_64] : memref<88x128xf32, #tpu.memory_space<vmem>>, vector<1x32xf32>
    %c30 = arith.constant 30 : index
    %c0_65 = arith.constant 0 : index
    %170 = vector.load %arg7[%c30, %c0_65] : memref<88x128xf32, #tpu.memory_space<vmem>>, vector<1x96xf32>
    %c31 = arith.constant 31 : index
    %c0_66 = arith.constant 0 : index
    %171 = vector.load %arg7[%c31, %c0_66] : memref<88x128xf32, #tpu.memory_space<vmem>>, vector<1x32xf32>
    %c32 = arith.constant 32 : index
    %c0_67 = arith.constant 0 : index
    %172 = vector.load %arg7[%c32, %c0_67] : memref<88x128xf32, #tpu.memory_space<vmem>>, vector<1x32xf32>
    %c33 = arith.constant 33 : index
    %c0_68 = arith.constant 0 : index
    %173 = vector.load %arg7[%c33, %c0_68] : memref<88x128xf32, #tpu.memory_space<vmem>>, vector<1x32xf32>
    %c34 = arith.constant 34 : index
    %c0_69 = arith.constant 0 : index
    %174 = vector.load %arg7[%c34, %c0_69] : memref<88x128xf32, #tpu.memory_space<vmem>>, vector<1x128xf32>
    %c35 = arith.constant 35 : index
    %c0_70 = arith.constant 0 : index
    %175 = vector.load %arg7[%c35, %c0_70] : memref<88x128xf32, #tpu.memory_space<vmem>>, vector<1x32xf32>
    %c1 = arith.constant 1 : index
    %c0_71 = arith.constant 0 : index
    %c0_72 = arith.constant 0 : index
    %176 = vector.load %arg3[%c1, %c0_71, %c0_72] : memref<2x32x96xbf16, #tpu.memory_space<vmem>>, vector<1x32x96xbf16>
    %177 = vector.shape_cast %176 : vector<1x32x96xbf16> to vector<32x96xbf16>
    %c1_73 = arith.constant 1 : index
    %c0_74 = arith.constant 0 : index
    %c0_75 = arith.constant 0 : index
    %178 = vector.load %arg4[%c1_73, %c0_74, %c0_75] : memref<2x32x32xbf16, #tpu.memory_space<vmem>>, vector<1x32x32xbf16>
    %179 = vector.shape_cast %178 : vector<1x32x32xbf16> to vector<32x32xbf16>
    %c1_76 = arith.constant 1 : index
    %c0_77 = arith.constant 0 : index
    %c0_78 = arith.constant 0 : index
    %180 = vector.load %arg5[%c1_76, %c0_77, %c0_78] : memref<2x32x128xbf16, #tpu.memory_space<vmem>>, vector<1x32x128xbf16>
    %181 = vector.shape_cast %180 : vector<1x32x128xbf16> to vector<32x128xbf16>
    %c1_79 = arith.constant 1 : index
    %c0_80 = arith.constant 0 : index
    %c0_81 = arith.constant 0 : index
    %182 = vector.load %arg6[%c1_79, %c0_80, %c0_81] : memref<2x128x32xbf16, #tpu.memory_space<vmem>>, vector<1x128x32xbf16>
    %183 = vector.shape_cast %182 : vector<1x128x32xbf16> to vector<128x32xbf16>
    %cst_82 = arith.constant dense<0.000000e+00> : vector<16xf32>
    %184 = vector.multi_reduction <add>, %167, %cst_82 [1] : vector<16x32xf32> to vector<16xf32>
    %185 = vector.shape_cast %184 : vector<16xf32> to vector<16x1xf32>
    %cst_83 = arith.constant 3.200000e+01 : f32
    %186 = vector.broadcast %cst_83 : f32 to vector<16x1xf32>
    %187 = arith.divf %185, %186 : vector<16x1xf32>
    %188 = vector.broadcast %187 : vector<16x1xf32> to vector<16x32xf32>
    %189 = arith.subf %167, %188 : vector<16x32xf32>
    %190 = arith.mulf %189, %189 : vector<16x32xf32>
    %cst_84 = arith.constant dense<0.000000e+00> : vector<16xf32>
    %191 = vector.multi_reduction <add>, %190, %cst_84 [1] : vector<16x32xf32> to vector<16xf32>
    %192 = vector.shape_cast %191 : vector<16xf32> to vector<16x1xf32>
    %cst_85 = arith.constant 3.200000e+01 : f32
    %193 = vector.broadcast %cst_85 : f32 to vector<16x1xf32>
    %194 = arith.divf %192, %193 : vector<16x1xf32>
    %195 = vector.broadcast %187 : vector<16x1xf32> to vector<16x32xf32>
    %196 = arith.subf %167, %195 : vector<16x32xf32>
    %cst_86 = arith.constant 9.99999974E-6 : f32
    %197 = vector.broadcast %cst_86 : f32 to vector<16x1xf32>
    %198 = arith.addf %194, %197 : vector<16x1xf32>
    %199 = math.rsqrt %198 : vector<16x1xf32>
    %200 = vector.broadcast %199 : vector<16x1xf32> to vector<16x32xf32>
    %201 = arith.mulf %196, %200 : vector<16x32xf32>
    %202 = vector.broadcast %168 : vector<1x32xf32> to vector<16x32xf32>
    %203 = arith.mulf %201, %202 : vector<16x32xf32>
    %204 = vector.broadcast %169 : vector<1x32xf32> to vector<16x32xf32>
    %205 = arith.addf %203, %204 : vector<16x32xf32>
    %206 = arith.truncf %205 : vector<16x32xf32> to vector<16x32xbf16>
    %cst_87 = arith.constant dense<0.000000e+00> : vector<16x96xf32>
    %207 = tpu.matmul %206, %177, %cst_87 {dimension_numbers = #tpu.dot_dimension_numbers<[1], [0], [0], [1], [0, 0, 1, 1], [], []>} : vector<16x32xbf16>, vector<32x96xbf16>, vector<16x96xf32> -> vector<16x96xf32>
    %208 = vector.broadcast %170 : vector<1x96xf32> to vector<16x96xf32>
    %209 = arith.addf %207, %208 : vector<16x96xf32>
    %210 = vector.extract_strided_slice %209 {offsets = [0, 0], sizes = [16, 16], strides = [1, 1]} : vector<16x96xf32> to vector<16x16xf32>
    %211 = arith.truncf %210 : vector<16x16xf32> to vector<16x16xbf16>
    %212 = vector.extract_strided_slice %209 {offsets = [0, 32], sizes = [16, 16], strides = [1, 1]} : vector<16x96xf32> to vector<16x16xf32>
    %213 = arith.truncf %212 : vector<16x16xf32> to vector<16x16xbf16>
    %214 = vector.extract_strided_slice %209 {offsets = [0, 64], sizes = [16, 16], strides = [1, 1]} : vector<16x96xf32> to vector<16x16xf32>
    %215 = arith.truncf %214 : vector<16x16xf32> to vector<16x16xbf16>
    %cst_88 = arith.constant dense<0.000000e+00> : vector<16x16xf32>
    %216 = tpu.matmul %211, %213, %cst_88 {dimension_numbers = #tpu.dot_dimension_numbers<[1], [1], [0], [0], [0, 0, 1, 0], [], []>} : vector<16x16xbf16>, vector<16x16xbf16>, vector<16x16xf32> -> vector<16x16xf32>
    %cst_89 = arith.constant 2.500000e-01 : f32
    %217 = vector.broadcast %cst_89 : f32 to vector<16x16xf32>
    %218 = arith.mulf %216, %217 : vector<16x16xf32>
    %219 = arith.addf %218, %5 : vector<16x16xf32>
    %cst_90 = arith.constant dense<0xFF800000> : vector<16xf32>
    %220 = vector.multi_reduction <maximumf>, %219, %cst_90 [1] : vector<16x16xf32> to vector<16xf32>
    %221 = vector.shape_cast %220 : vector<16xf32> to vector<16x1xf32>
    %222 = vector.broadcast %221 : vector<16x1xf32> to vector<16x16xf32>
    %223 = arith.subf %219, %222 : vector<16x16xf32>
    %224 = math.exp %223 : vector<16x16xf32>
    %cst_91 = arith.constant dense<0.000000e+00> : vector<16xf32>
    %225 = vector.multi_reduction <add>, %224, %cst_91 [1] : vector<16x16xf32> to vector<16xf32>
    %226 = vector.shape_cast %225 : vector<16xf32> to vector<16x1xf32>
    %227 = tpu.reciprocal %226 {approx = true} : vector<16x1xf32> -> vector<16x1xf32>
    %228 = vector.broadcast %227 : vector<16x1xf32> to vector<16x16xf32>
    %229 = arith.mulf %224, %228 : vector<16x16xf32>
    %230 = arith.truncf %229 : vector<16x16xf32> to vector<16x16xbf16>
    %cst_92 = arith.constant dense<0.000000e+00> : vector<16x16xf32>
    %231 = tpu.matmul %230, %215, %cst_92 {dimension_numbers = #tpu.dot_dimension_numbers<[1], [0], [0], [1], [0, 0, 1, 1], [], []>} : vector<16x16xbf16>, vector<16x16xbf16>, vector<16x16xf32> -> vector<16x16xf32>
    %232 = arith.truncf %231 : vector<16x16xf32> to vector<16x16xbf16>
    %233 = vector.extract_strided_slice %179 {offsets = [0, 0], sizes = [16, 32], strides = [1, 1]} : vector<32x32xbf16> to vector<16x32xbf16>
    %cst_93 = arith.constant dense<0.000000e+00> : vector<16x32xf32>
    %234 = tpu.matmul %232, %233, %cst_93 {dimension_numbers = #tpu.dot_dimension_numbers<[1], [0], [0], [1], [0, 0, 1, 1], [], []>} : vector<16x16xbf16>, vector<16x32xbf16>, vector<16x32xf32> -> vector<16x32xf32>
    %235 = vector.extract_strided_slice %209 {offsets = [0, 16], sizes = [16, 16], strides = [1, 1]} : vector<16x96xf32> to vector<16x16xf32>
    %236 = arith.truncf %235 : vector<16x16xf32> to vector<16x16xbf16>
    %237 = vector.extract_strided_slice %209 {offsets = [0, 48], sizes = [16, 16], strides = [1, 1]} : vector<16x96xf32> to vector<16x16xf32>
    %238 = arith.truncf %237 : vector<16x16xf32> to vector<16x16xbf16>
    %239 = vector.extract_strided_slice %209 {offsets = [0, 80], sizes = [16, 16], strides = [1, 1]} : vector<16x96xf32> to vector<16x16xf32>
    %240 = arith.truncf %239 : vector<16x16xf32> to vector<16x16xbf16>
    %cst_94 = arith.constant dense<0.000000e+00> : vector<16x16xf32>
    %241 = tpu.matmul %236, %238, %cst_94 {dimension_numbers = #tpu.dot_dimension_numbers<[1], [1], [0], [0], [0, 0, 1, 0], [], []>} : vector<16x16xbf16>, vector<16x16xbf16>, vector<16x16xf32> -> vector<16x16xf32>
    %cst_95 = arith.constant 2.500000e-01 : f32
    %242 = vector.broadcast %cst_95 : f32 to vector<16x16xf32>
    %243 = arith.mulf %241, %242 : vector<16x16xf32>
    %244 = arith.addf %243, %5 : vector<16x16xf32>
    %cst_96 = arith.constant dense<0xFF800000> : vector<16xf32>
    %245 = vector.multi_reduction <maximumf>, %244, %cst_96 [1] : vector<16x16xf32> to vector<16xf32>
    %246 = vector.shape_cast %245 : vector<16xf32> to vector<16x1xf32>
    %247 = vector.broadcast %246 : vector<16x1xf32> to vector<16x16xf32>
    %248 = arith.subf %244, %247 : vector<16x16xf32>
    %249 = math.exp %248 : vector<16x16xf32>
    %cst_97 = arith.constant dense<0.000000e+00> : vector<16xf32>
    %250 = vector.multi_reduction <add>, %249, %cst_97 [1] : vector<16x16xf32> to vector<16xf32>
    %251 = vector.shape_cast %250 : vector<16xf32> to vector<16x1xf32>
    %252 = tpu.reciprocal %251 {approx = true} : vector<16x1xf32> -> vector<16x1xf32>
    %253 = vector.broadcast %252 : vector<16x1xf32> to vector<16x16xf32>
    %254 = arith.mulf %249, %253 : vector<16x16xf32>
    %255 = arith.truncf %254 : vector<16x16xf32> to vector<16x16xbf16>
    %cst_98 = arith.constant dense<0.000000e+00> : vector<16x16xf32>
    %256 = tpu.matmul %255, %240, %cst_98 {dimension_numbers = #tpu.dot_dimension_numbers<[1], [0], [0], [1], [0, 0, 1, 1], [], []>} : vector<16x16xbf16>, vector<16x16xbf16>, vector<16x16xf32> -> vector<16x16xf32>
    %257 = arith.truncf %256 : vector<16x16xf32> to vector<16x16xbf16>
    %258 = vector.extract_strided_slice %179 {offsets = [16, 0], sizes = [16, 32], strides = [1, 1]} : vector<32x32xbf16> to vector<16x32xbf16>
    %cst_99 = arith.constant dense<0.000000e+00> : vector<16x32xf32>
    %259 = tpu.matmul %257, %258, %cst_99 {dimension_numbers = #tpu.dot_dimension_numbers<[1], [0], [0], [1], [0, 0, 1, 1], [], []>} : vector<16x16xbf16>, vector<16x32xbf16>, vector<16x32xf32> -> vector<16x32xf32>
    %260 = arith.addf %234, %259 : vector<16x32xf32>
    %261 = arith.addf %167, %260 : vector<16x32xf32>
    %262 = vector.broadcast %171 : vector<1x32xf32> to vector<16x32xf32>
    %263 = arith.addf %261, %262 : vector<16x32xf32>
    %cst_100 = arith.constant dense<0.000000e+00> : vector<16xf32>
    %264 = vector.multi_reduction <add>, %263, %cst_100 [1] : vector<16x32xf32> to vector<16xf32>
    %265 = vector.shape_cast %264 : vector<16xf32> to vector<16x1xf32>
    %cst_101 = arith.constant 3.200000e+01 : f32
    %266 = vector.broadcast %cst_101 : f32 to vector<16x1xf32>
    %267 = arith.divf %265, %266 : vector<16x1xf32>
    %268 = vector.broadcast %267 : vector<16x1xf32> to vector<16x32xf32>
    %269 = arith.subf %263, %268 : vector<16x32xf32>
    %270 = arith.mulf %269, %269 : vector<16x32xf32>
    %cst_102 = arith.constant dense<0.000000e+00> : vector<16xf32>
    %271 = vector.multi_reduction <add>, %270, %cst_102 [1] : vector<16x32xf32> to vector<16xf32>
    %272 = vector.shape_cast %271 : vector<16xf32> to vector<16x1xf32>
    %cst_103 = arith.constant 3.200000e+01 : f32
    %273 = vector.broadcast %cst_103 : f32 to vector<16x1xf32>
    %274 = arith.divf %272, %273 : vector<16x1xf32>
    %275 = vector.broadcast %267 : vector<16x1xf32> to vector<16x32xf32>
    %276 = arith.subf %263, %275 : vector<16x32xf32>
    %cst_104 = arith.constant 9.99999974E-6 : f32
    %277 = vector.broadcast %cst_104 : f32 to vector<16x1xf32>
    %278 = arith.addf %274, %277 : vector<16x1xf32>
    %279 = math.rsqrt %278 : vector<16x1xf32>
    %280 = vector.broadcast %279 : vector<16x1xf32> to vector<16x32xf32>
    %281 = arith.mulf %276, %280 : vector<16x32xf32>
    %282 = vector.broadcast %172 : vector<1x32xf32> to vector<16x32xf32>
    %283 = arith.mulf %281, %282 : vector<16x32xf32>
    %284 = vector.broadcast %173 : vector<1x32xf32> to vector<16x32xf32>
    %285 = arith.addf %283, %284 : vector<16x32xf32>
    %286 = arith.truncf %285 : vector<16x32xf32> to vector<16x32xbf16>
    %cst_105 = arith.constant dense<0.000000e+00> : vector<16x128xf32>
    %287 = tpu.matmul %286, %181, %cst_105 {dimension_numbers = #tpu.dot_dimension_numbers<[1], [0], [0], [1], [0, 0, 1, 1], [], []>} : vector<16x32xbf16>, vector<32x128xbf16>, vector<16x128xf32> -> vector<16x128xf32>
    %288 = vector.broadcast %174 : vector<1x128xf32> to vector<16x128xf32>
    %289 = arith.addf %287, %288 : vector<16x128xf32>
    %cst_106 = arith.constant 1.702000e+00 : f32
    %290 = vector.broadcast %cst_106 : f32 to vector<16x128xf32>
    %291 = arith.mulf %290, %289 : vector<16x128xf32>
    %292 = arith.negf %291 : vector<16x128xf32>
    %293 = math.exp %292 : vector<16x128xf32>
    %cst_107 = arith.constant 1.000000e+00 : f32
    %294 = vector.broadcast %cst_107 : f32 to vector<16x128xf32>
    %295 = arith.addf %294, %293 : vector<16x128xf32>
    %296 = arith.divf %294, %295 : vector<16x128xf32>
    %297 = arith.mulf %289, %296 : vector<16x128xf32>
    %298 = arith.truncf %297 : vector<16x128xf32> to vector<16x128xbf16>
    %cst_108 = arith.constant dense<0.000000e+00> : vector<16x32xf32>
    %299 = tpu.matmul %298, %183, %cst_108 {dimension_numbers = #tpu.dot_dimension_numbers<[1], [0], [0], [1], [0, 0, 1, 1], [], []>} : vector<16x128xbf16>, vector<128x32xbf16>, vector<16x32xf32> -> vector<16x32xf32>
    %300 = vector.broadcast %175 : vector<1x32xf32> to vector<16x32xf32>
    %301 = arith.addf %299, %300 : vector<16x32xf32>
    %302 = arith.addf %263, %301 : vector<16x32xf32>
    %cst_109 = arith.constant dense<0.000000e+00> : vector<16xf32>
    %303 = vector.multi_reduction <add>, %302, %cst_109 [1] : vector<16x32xf32> to vector<16xf32>
    %304 = vector.shape_cast %303 : vector<16xf32> to vector<16x1xf32>
    %cst_110 = arith.constant 3.200000e+01 : f32
    %305 = vector.broadcast %cst_110 : f32 to vector<16x1xf32>
    %306 = arith.divf %304, %305 : vector<16x1xf32>
    %307 = vector.broadcast %306 : vector<16x1xf32> to vector<16x32xf32>
    %308 = arith.subf %302, %307 : vector<16x32xf32>
    %309 = arith.mulf %308, %308 : vector<16x32xf32>
    %cst_111 = arith.constant dense<0.000000e+00> : vector<16xf32>
    %310 = vector.multi_reduction <add>, %309, %cst_111 [1] : vector<16x32xf32> to vector<16xf32>
    %311 = vector.shape_cast %310 : vector<16xf32> to vector<16x1xf32>
    %cst_112 = arith.constant 3.200000e+01 : f32
    %312 = vector.broadcast %cst_112 : f32 to vector<16x1xf32>
    %313 = arith.divf %311, %312 : vector<16x1xf32>
    %314 = vector.broadcast %306 : vector<16x1xf32> to vector<16x32xf32>
    %315 = arith.subf %302, %314 : vector<16x32xf32>
    %cst_113 = arith.constant 9.99999974E-6 : f32
    %316 = vector.broadcast %cst_113 : f32 to vector<16x1xf32>
    %317 = arith.addf %313, %316 : vector<16x1xf32>
    %318 = math.rsqrt %317 : vector<16x1xf32>
    %319 = vector.broadcast %318 : vector<16x1xf32> to vector<16x32xf32>
    %320 = arith.mulf %315, %319 : vector<16x32xf32>
    %321 = vector.broadcast %3 : vector<1x32xf32> to vector<16x32xf32>
    %322 = arith.mulf %320, %321 : vector<16x32xf32>
    %323 = vector.broadcast %4 : vector<1x32xf32> to vector<16x32xf32>
    %324 = arith.addf %322, %323 : vector<16x32xf32>
    %325 = arith.truncf %324 : vector<16x32xf32> to vector<16x32xbf16>
    %326 = arith.truncf %6 : vector<32x128xf32> to vector<32x128xbf16>
    %cst_114 = arith.constant dense<0.000000e+00> : vector<16x128xf32>
    %327 = tpu.matmul %325, %326, %cst_114 {dimension_numbers = #tpu.dot_dimension_numbers<[1], [0], [0], [1], [0, 0, 1, 1], [], []>} : vector<16x32xbf16>, vector<32x128xbf16>, vector<16x128xf32> -> vector<16x128xf32>
    %328 = arith.mulf %327, %327 : vector<16x128xf32>
    %cst_115 = arith.constant dense<0.000000e+00> : vector<16xf32>
    %329 = vector.multi_reduction <add>, %328, %cst_115 [1] : vector<16x128xf32> to vector<16xf32>
    %330 = vector.shape_cast %329 : vector<16xf32> to vector<16x1xf32>
    %cst_116 = arith.constant 9.99999996E-13 : f32
    %331 = vector.broadcast %cst_116 : f32 to vector<16x1xf32>
    %332 = arith.addf %330, %331 : vector<16x1xf32>
    %333 = math.rsqrt %332 : vector<16x1xf32>
    %334 = vector.broadcast %333 : vector<16x1xf32> to vector<16x128xf32>
    %335 = arith.mulf %327, %334 : vector<16x128xf32>
    %c0_117 = arith.constant 0 : index
    %c0_118 = arith.constant 0 : index
    %336 = vector.load %arg8[%c0_117, %c0_118] : memref<16x128xf32, #tpu.memory_space<vmem>>, vector<16x128xf32>
    tpu.vector_store %arg8[%c0_117, %c0_118], %335 {strides = array<i32>} : memref<16x128xf32, #tpu.memory_space<vmem>>, vector<16x128xf32>,
    return
  }
  func.func @transform_0(%arg0: i32) -> (i32, i32) {
    %c0_i32 = arith.constant 0 : i32
    %c0_i32_0 = arith.constant 0 : i32
    %c0_i32_1 = arith.constant 0 : i32
    return %c0_i32, %c0_i32_0 : i32, i32
  }
  func.func @transform_1(%arg0: i32) -> (i32, i32) {
    %c0_i32 = arith.constant 0 : i32
    %c0_i32_0 = arith.constant 0 : i32
    %c0_i32_1 = arith.constant 0 : i32
    return %c0_i32, %c0_i32_0 : i32, i32
  }
  func.func @transform_2(%arg0: i32) -> (i32, i32, i32) {
    %c0_i32 = arith.constant 0 : i32
    %c0_i32_0 = arith.constant 0 : i32
    %c0_i32_1 = arith.constant 0 : i32
    %c0_i32_2 = arith.constant 0 : i32
    return %c0_i32, %c0_i32_0, %c0_i32_1 : i32, i32, i32
  }
  func.func @transform_3(%arg0: i32) -> (i32, i32, i32) {
    %c0_i32 = arith.constant 0 : i32
    %c0_i32_0 = arith.constant 0 : i32
    %c0_i32_1 = arith.constant 0 : i32
    %c0_i32_2 = arith.constant 0 : i32
    return %c0_i32, %c0_i32_0, %c0_i32_1 : i32, i32, i32
  }
  func.func @transform_4(%arg0: i32) -> (i32, i32, i32) {
    %c0_i32 = arith.constant 0 : i32
    %c0_i32_0 = arith.constant 0 : i32
    %c0_i32_1 = arith.constant 0 : i32
    %c0_i32_2 = arith.constant 0 : i32
    return %c0_i32, %c0_i32_0, %c0_i32_1 : i32, i32, i32
  }
  func.func @transform_5(%arg0: i32) -> (i32, i32, i32) {
    %c0_i32 = arith.constant 0 : i32
    %c0_i32_0 = arith.constant 0 : i32
    %c0_i32_1 = arith.constant 0 : i32
    %c0_i32_2 = arith.constant 0 : i32
    return %c0_i32, %c0_i32_0, %c0_i32_1 : i32, i32, i32
  }
  func.func @transform_6(%arg0: i32) -> (i32, i32) {
    %c0_i32 = arith.constant 0 : i32
    %c0_i32_0 = arith.constant 0 : i32
    %c0_i32_1 = arith.constant 0 : i32
    return %c0_i32, %c0_i32_0 : i32, i32
  }
  func.func @transform_7(%arg0: i32) -> (i32, i32) {
    %c0_i32 = arith.constant 0 : i32
    %c0_i32_0 = arith.constant 0 : i32
    %c0_i32_1 = arith.constant 0 : i32
    return %c0_i32, %c0_i32_0 : i32, i32
  }
}

</mosaic_0001>

<bundles_post_ra>
// kernel: tpu_custom_call.1
= control target key start
LH: loop header
LB: loop body
LE: loop exit
PB: predicated region body
PF: predicated region fallthrough
CT: control target
= control target key end

     0   :  { %v2239_v1 = vmov 0   ;;  %vm147_vm0 = vcmask 523264   ;;  %s2727_s0 = inlined_call_operand.vmem [shape: bf16[16,192], index: 0, kind: input, shape index: {}]   ;;  %s2728_s1 = inlined_call_operand.vmem [shape: bf16[192,32], index: 1, kind: input, shape index: {}]   ;;  %s2729_s2 = inlined_call_operand.vmem [shape: bf16[2,32,96], index: 2, kind: input, shape index: {}]   ;;  %s2730_s3 = inlined_call_operand.vmem [shape: bf16[2,32,32], index: 3, kind: input, shape index: {}]   ;;  %s2731_s4 = inlined_call_operand.vmem [shape: bf16[2,32,128], index: 4, kind: input, shape index: {}]   ;;  %s2732_s5 = inlined_call_operand.vmem [shape: bf16[2,128,32], index: 5, kind: input, shape index: {}]   ;;  %s2733_s6 = inlined_call_operand.vmem [shape: f32[88,128], index: 6, kind: input, shape index: {}]   ;;  %s2734_s7 = inlined_call_operand.hbm [shape: f32[16,128], index: 7, kind: output, shape index: {}]  }
   0x1   :  { %v2096_v0 = vld [vmem:[%s2728_s1] sm:$0xff]   ;;  %151 = vmatprep.subr.bf16.mxu0 %v2239_v1  ;;  %v2097_v2 = vld [vmem:[%s2728_s1 + $0x8] sm:$0xff]   ;;  %v2098_v3 = vld [vmem:[%s2728_s1 + $0x10] sm:$0xff]  }
   0x2   :  { %152 = vmatpush1.bf16.msra.mxu0 %v2096_v0  ;;  %v2099_v4 = vld [vmem:[%s2728_s1 + $0x18] sm:$0xff]   ;;  %v2100_v5 = vld [vmem:[%s2728_s1 + $0x20] sm:$0xff]   ;;  %v2101_v7 = vld [vmem:[%s2728_s1 + $0x28] sm:$0xff]  }
   0x3   :  { %153 = vmatprep.subr.bf16.mxu0 %v2239_v1  ;;  %v2110_v6 = vld [vmem:[%s2727_s0 + $0x4] ss:$8 sps:$4 sm:$0xff]   ;;  %v2102_v8 = vld [vmem:[%s2728_s1 + $0x30] sm:$0xff]   ;;  %v2103_v9 = vld [vmem:[%s2728_s1 + $0x38] sm:$0xff]  }
   0x4   :  { %1778 = vmatprep.mubr.msk.bf16.mxu0 %vm147_vm0, %v2110_v6  ;;  %v2104_v10 = vld [vmem:[%s2728_s1 + $0x40] sm:$0xff]  }
   0x6   :  { %154 = vmatpush1.bf16.msra.mxu0 %v2097_v2 }
   0x7   :  { %155 = vmatprep.subr.bf16.mxu0 %v2239_v1 }
   0xa   :  { %156 = vmatpush1.bf16.msra.mxu0 %v2098_v3 }
   0xb   :  { %157 = vmatprep.subr.bf16.mxu0 %v2239_v1 }
   0xe   :  { %158 = vmatpush1.bf16.msra.mxu0 %v2099_v4 }
   0xf   :  { %159 = vmatprep.subr.bf16.mxu0 %v2239_v1 }
  0x12   :  { %160 = vmatpush1.bf16.msra.mxu0 %v2100_v5 }
  0x13   :  { %161 = vmatprep.subr.bf16.mxu0 %v2239_v1 }
  0x16   :  { %162 = vmatpush1.bf16.msra.mxu0 %v2101_v7 }
  0x17   :  { %163 = vmatprep.subr.bf16.mxu0 %v2239_v1 }
  0x1a   :  { %164 = vmatpush1.bf16.msra.mxu0 %v2102_v8 }
  0x1b   :  { %165 = vmatprep.subr.bf16.mxu0 %v2239_v1 }
  0x1e   :  { %166 = vmatpush1.bf16.msra.mxu0 %v2103_v9 }
  0x1f   :  { %167 = vmatprep.subr.bf16.mxu0 %v2239_v1 }
  0x20   :  { %12 = vsyncpa [#allocation3], 0  ;;  %v2105_v11 = vld [vmem:[%s2728_s1 + $0x48] sm:$0xff]   ;;  %v2106_v12 = vld [vmem:[%s2728_s1 + $0x50] sm:$0xff]   ;;  %vm192_vm1 = vcmask 261120   ;;  %v2240_v0 = vmov 0.0  }
  0x21   :  { %v2107_v13 = vld [vmem:[%s2728_s1 + $0x58] sm:$0xff]   ;;  %v2108_v14 = vld [vmem:[%s2727_s0] ss:$8 sps:$4 sm:$0xff]   ;;  %v1779_v42 = vld [vmem:[%s2733_s6 + $0x10] ss:$0 sm:$0xff]  ;;  %1933 = vmatprep.subr.bf16.mxu1 %v2240_v0  ;;  %vm2241_vm2 = vmmov 0  }
  0x22   :  { %168 = vmatpush1.bf16.msra.mxu0 %v2104_v10  ;;  %v28_v15 = vld [vmem:[%s2733_s6] sm:$0xff]  ;;  %v29_v17 = vld [vmem:[%s2733_s6 + $0x8] sm:$0xff]  ;;  %v1780_v44 = vld [vmem:[%s2733_s6 + $0x11] ss:$0 sm:$0xff]  ;;  %1937 = vmatprep.mubr.msk.bf16.mxu1 %vm2241_vm2, %v2240_v0  ;;  %s2242_s22 = smov 96   ;;  %s2243_s23 = smov 80  }
  0x23   :  { %169 = vmatprep.subr.bf16.mxu0 %v2239_v1  ;;  %v2111_v63 = vld [vmem:[%s2729_s2] sm:$0xff]   ;;  %v1781_v10 = vld [vmem:[%s2733_s6 + $0x14] ss:$0 sm:$0xff]  ;;  %s2244_s24 = smov 112   ;;  %vm371_vm3 = vcmask 130048   ;;  %s2245_s29 = smov 64  }
  0x24   :  { %1934 = vmatpush3.bf16.msra.mxu1 %v2111_v63  ;;  %s2246_s30 = smov 48  }
  0x25   :  { %1935 = vmatprep.subr.bf16.mxu1 %v2240_v0 }
  0x26   :  { %170 = vmatpush1.bf16.msra.mxu0 %v2105_v11 }
  0x27   :  { %171 = vmatprep.subr.bf16.mxu0 %v2239_v1 }
  0x2a   :  { %172 = vmatpush1.bf16.msra.mxu0 %v2106_v12 }
  0x2b   :  { %173 = vmatprep.subr.bf16.mxu0 %v2239_v1  ;;  %v2112_v1 = vld [vmem:[%s2729_s2 + $0x8] sm:$0xff]  }
  0x2c   :  { %1936 = vmatpush3.bf16.msra.mxu1 %v2112_v1 }
  0x2d   :  { %1941 = vmatprep.subr.bf16.mxu1 %v2240_v0 }
  0x2e   :  { %174 = vmatpush1.bf16.msra.mxu0 %v2107_v13 }
  0x2f   :  { %1985 = vmatprep.subr.bf16.mxu0 %v2240_v0 }
  0x31   :  { %184 = vmatmul.mubr.bf16.vlgmr.msra.gmra.mrb[0].mxu0 %v2108_v14  ;;  %v1782_v14 = vld [vmem:[%s2733_s6 + $0x15] ss:$0 sm:$0xff] }
  0x32   :  { %2001 = vmatprep.mubr.msk.bf16.mxu0 %vm2241_vm2, %v2240_v0 }
 0x104   :  { %v185_v16 = vpop.f32.mrb[0].mxu0 }
 0x105   :  { %v186_v18 = vadd.f32 %v185_v16, %v28_v15  ;;  %v187_v19 = vpop.f32.mrb[1].mxu0 }
 0x106   :  { %v188_v20 = vpop.f32.mrb[2].mxu0  ;;  %v1783_v19 = vld [vmem:[%s2733_s6 + $0x16] ss:$0 sm:$0xff] }
 0x107   :  { %v189_v21 = vadd.f32 %v188_v20, %v29_v17  ;;  %v190_v22 = vpop.f32.mrb[3].mxu0  ;;  %v193_v23 = vsel %vm192_vm1, %v186_v18, 0.0 }
 0x108   :  { %194 = vadd.xlane.f32.xlu0 %v193_v23 }
 0x109   :  { %v196_v24 = vsel %vm192_vm1, %v189_v21, 0.0 }
 0x10c   :  { %197 = vadd.xlane.f32.xlu0 %v196_v24 }
 0x195   :  { %v195_v25 = vpop.xlane.xlu0 %194 }
 0x196   :  { %v200_v26 = vmul.f32 0.03125, %v195_v25 }
 0x198   :  { %v202_v27 = vsub.f32 %v186_v18, %v200_v26 }
 0x199   :  { %v198_v28 = vpop.xlane.xlu0 %197 }
 0x19a   :  { %v201_v29 = vmul.f32 0.03125, %v198_v28  ;;  %v204_v30 = vmul.f32 %v202_v27, %v202_v27 }
 0x19c   :  { %v203_v31 = vsub.f32 %v189_v21, %v201_v29  ;;  %v206_v32 = vsel %vm192_vm1, %v204_v30, 0.0  ;;  %v2403_v30 = vld [vmem:[%s2733_s6 + $0x24] sm:$0xff] }
 0x19d   :  { %207 = vadd.xlane.f32.xlu1 %v206_v32 }
 0x19e   :  { %v205_v33 = vmul.f32 %v203_v31, %v203_v31 }
 0x1a0   :  { %v209_v34 = vsel %vm192_vm1, %v205_v33, 0.0 }
 0x1a1   :  { %210 = vadd.xlane.f32.xlu1 %v209_v34  ;;  %v2408_v34 = vld [vmem:[%s2733_s6 + $0x2c] sm:$0xff] }
 0x22a   :  { %v208_v35 = vpop.xlane.xlu1 %207 }
 0x22b   :  { %v212_v36 = vmul.f32 0.03125, %v208_v35 }
 0x22d   :  { %v214_v37 = vadd.f32 1e-05, %v212_v36 }
 0x22e   :  { %v211_v38 = vpop.xlane.xlu1 %210 }
 0x22f   :  { %2139 = vrsqrt.f32 %v214_v37  ;;  %v213_v39 = vmul.f32 0.03125, %v211_v38 }
 0x231   :  { %v215_v40 = vadd.f32 1e-05, %v213_v39 }
 0x233   :  { %2141 = vrsqrt.f32 %v215_v40 }
 0x239   :  { %v2140_v41 = vpop.eup %2139 }
 0x23a   :  { %v218_v43 = vmul.f32 %v2140_v41, %v202_v27 }
 0x23c   :  { %v224_v45 = vmul.f32 %v1779_v42, %v218_v43 }
 0x23d   :  { %v2142_v46 = vpop.eup %2141 }
 0x23e   :  { %v2348_v47 = vadd.f32 %v1780_v44, %v224_v45  ;;  %v219_v48 = vmul.f32 %v2142_v46, %v203_v31 }
 0x240   :  { %v268_v49 = vsel %vm192_vm1, %v2348_v47, 0.0  ;;  %v225_v50 = vmul.f32 %v1779_v42, %v219_v48 }
 0x241   :  { %269 = vadd.xlane.f32.xlu0 %v268_v49 }
 0x242   :  { %v2352_v51 = vadd.f32 %v1780_v44, %v225_v50 }
 0x244   :  { %v271_v52 = vsel %vm192_vm1, %v2352_v51, 0.0 }
 0x245   :  { %272 = vadd.xlane.f32.xlu1 %v271_v52 }
 0x2ce   :  { %v270_v53 = vpop.xlane.xlu0 %269 }
 0x2cf   :  { %v274_v54 = vmul.f32 0.03125, %v270_v53 }
 0x2d1   :  { %v276_v55 = vsub.f32 %v2348_v47, %v274_v54 }
 0x2d2   :  { %v273_v56 = vpop.xlane.xlu1 %272 }
 0x2d3   :  { %v275_v57 = vmul.f32 0.03125, %v273_v56  ;;  %v278_v58 = vmul.f32 %v276_v55, %v276_v55 }
 0x2d5   :  { %v277_v59 = vsub.f32 %v2352_v51, %v275_v57  ;;  %v280_v60 = vsel %vm192_vm1, %v278_v58, 0.0 }
 0x2d6   :  { %281 = vadd.xlane.f32.xlu0 %v280_v60 }
 0x2d7   :  { %v279_v61 = vmul.f32 %v277_v59, %v277_v59 }
 0x2d9   :  { %v283_v62 = vsel %vm192_vm1, %v279_v61, 0.0 }
 0x2da   :  { %284 = vadd.xlane.f32.xlu1 %v283_v62 }
 0x363   :  { %v282_v2 = vpop.xlane.xlu0 %281 }
 0x364   :  { %v286_v3 = vmul.f32 0.03125, %v282_v2 }
 0x366   :  { %v288_v4 = vadd.f32 1e-05, %v286_v3 }
 0x367   :  { %v285_v5 = vpop.xlane.xlu1 %284 }
 0x368   :  { %2143 = vrsqrt.f32 %v288_v4  ;;  %v287_v6 = vmul.f32 0.03125, %v285_v5 }
 0x36a   :  { %v289_v7 = vadd.f32 1e-05, %v287_v6 }
 0x36c   :  { %2145 = vrsqrt.f32 %v289_v7 }
 0x372   :  { %v2144_v8 = vpop.eup %2143 }
 0x373   :  { %v292_v9 = vmul.f32 %v2144_v8, %v276_v55 }
 0x375   :  { %v298_v13 = vmul.f32 %v1781_v10, %v292_v9 }
 0x376   :  { %v2146_v11 = vpop.eup %2145 }
 0x377   :  { %v293_v12 = vmul.f32 %v2146_v11, %v277_v59  ;;  %v304_v16 = vadd.f32 %v1782_v14, %v298_v13 }
 0x379   :  { %v299_v15 = vmul.f32 %v1781_v10, %v293_v12 }
 0x37b   :  { %v305_v17 = vadd.f32 %v1782_v14, %v299_v15 }
 0x37d   :  { %v306_v18 = vpack.c.bf16 %v305_v17, %v304_v16 }
 0x37f   :  { %1938 = vmatmul.mubr.msk.bf16.vlgmr.msra.gmra.mrb[0].mxu1 %vm192_vm1, %v306_v18 }
 0x380   :  { %1943 = vmatprep.mubr.msk.bf16.mxu1 %vm2241_vm2, %v2240_v0 }
 0x452   :  { %v360_v20 = vpop.f32.mrb[0].mxu1 }
 0x453   :  { %v1939_v21 = vpop.f32.mrb[1].mxu1  ;;  %v361_v23 = vadd.f32 %v1783_v19, %v360_v20 }
 0x454   :  { %v363_v22 = vpop.f32.mrb[2].mxu1 }
 0x455   :  { %v364_v24 = vadd.f32 %v1783_v19, %v363_v22  ;;  %v1940_v25 = vpop.f32.mrb[3].mxu1 }
 0x457   :  { %v2386_v26 = vpack.c.bf16 %v364_v24, %v361_v23 }
 0x459   :  { %369 = vrot.lane.b32.xlu0 %v2386_v26, %s2242_s22 }
 0x45d   :  { %496 = vrot.lane.b32.xlu0 %v2386_v26, %s2243_s23 }
 0x461   :  { %494 = vrot.lane.b32.xlu0 %v2386_v26, %s2244_s24 }
 0x4cb   :  { %v370_v27 = vpop.permute.xlu0 %369 }
 0x4cc   :  { %v376_v28 = vsel %vm371_vm3, %v370_v27, 0 }
 0x4cd   :  { %1942 = vmatpush3.bf16.xpose.msra.mxu1 %v376_v28 }
 0x4ce   :  { %1947 = vmatprep.subr.bf16.mxu1 %v2240_v0 }
 0x4cf   :  { %v497_v60 = vpop.permute.xlu0 %496 }
 0x4d0   :  { %v502_v62 = vsel %vm371_vm3, %v497_v60, 0 }
 0x4d3   :  { %v495_v63 = vpop.permute.xlu0 %494 }
 0x4d4   :  { %1944 = vmatmul.mubr.msk.bf16.vlgmr.msra.gmra.mrb[4].mxu1 %vm371_vm3, %v2386_v26 }
 0x4d5   :  { %1949 = vmatprep.mubr.msk.bf16.mxu1 %vm2241_vm2, %v2240_v0 }
 0x5a7   :  { %v412_v29 = vpop.f32.mrb[4].mxu1 }
 0x5a8   :  { %v419_v31 = vmul.f32 0.25, %v412_v29  ;;  %v1945_v32 = vpop.f32.mrb[5].mxu1 }
 0x5a9   :  { %v415_v33 = vpop.f32.mrb[6].mxu1 }
 0x5aa   :  { %v420_v35 = vmul.f32 0.25, %v415_v33  ;;  %v1946_v36 = vpop.f32.mrb[7].mxu1  ;;  %v421_v37 = vadd.f32 %v419_v31, %v2403_v30 }
 0x5ab   :  { %v2113_v36 = vld [vmem:[%s2730_s3 + $0x8] sm:$0xff]  }
 0x5ac   :  { %v423_v38 = vsel %vm371_vm3, %v421_v37, -inf  ;;  %v422_v39 = vadd.f32 %v420_v35, %v2408_v34 }
 0x5ad   :  { %424 = vmax.xlane.f32.xlu1 %v423_v38 }
 0x5ae   :  { %v426_v40 = vsel %vm371_vm3, %v422_v39, -inf }
 0x5b1   :  { %427 = vmax.xlane.f32.xlu1 %v426_v40  ;;  %v2114_v40 = vld [vmem:[%s2730_s3] sm:$0xff]  }
 0x63a   :  { %v425_v41 = vpop.xlane.xlu1 %424 }
 0x63b   :  { %v429_v42 = vsub.f32 %v421_v37, %v425_v41 }
 0x63d   :  { %v431_v43 = vmul.f32 1.442695, %v429_v42 }
 0x63e   :  { %v428_v44 = vpop.xlane.xlu1 %427 }
 0x63f   :  { %2147 = vpow2.f32 %v431_v43  ;;  %v430_v45 = vsub.f32 %v422_v39, %v428_v44 }
 0x641   :  { %v433_v46 = vmul.f32 1.442695, %v430_v45 }
 0x643   :  { %2149 = vpow2.f32 %v433_v46 }
 0x649   :  { %v2148_v48 = vpop.eup %2147 }
 0x64a   :  { %v435_v49 = vsel %vm371_vm3, %v2148_v48, 0.0 }
 0x64b   :  { %436 = vadd.xlane.f32.xlu1 %v435_v49 }
 0x64d   :  { %v2150_v50 = vpop.eup %2149 }
 0x64e   :  { %v438_v52 = vsel %vm371_vm3, %v2150_v50, 0.0 }
 0x64f   :  { %439 = vadd.xlane.f32.xlu1 %v438_v52  ;;  %v1795_v52 = vld [vmem:[%s2733_s6 + $0x17] ss:$0 sm:$0xff] }
 0x660   :  { %446 = vrot.lane.b32.xlu1 %v2386_v26, %s2245_s29 }
 0x6d8   :  { %v437_v53 = vpop.xlane.xlu1 %436 }
 0x6d9   :  { %2151 = vrcp.f32 %v437_v53 }
 0x6dc   :  { %v440_v54 = vpop.xlane.xlu1 %439 }
 0x6dd   :  { %2153 = vrcp.f32 %v440_v54 }
 0x6e0   :  { %v447_v55 = vpop.permute.xlu1 %446 }
 0x6e1   :  { %1948 = vmatpush3.bf16.msra.mxu1 %v447_v55 }
 0x6e2   :  { %1953 = vmatprep.subr.bf16.mxu1 %v2240_v0 }
 0x6e3   :  { %v2152_v56 = vpop.eup %2151 }
 0x6e4   :  { %v443_v58 = vmul.f32 %v2152_v56, %v2148_v48 }
 0x6e7   :  { %v2154_v57 = vpop.eup %2153 }
 0x6e8   :  { %v444_v59 = vmul.f32 %v2154_v57, %v2150_v50 }
 0x6ea   :  { %v445_v61 = vpack.c.bf16 %v444_v59, %v443_v58 }
 0x6ec   :  { %1950 = vmatmul.mubr.msk.bf16.vlgmr.msra.gmra.mrb[8].mxu1 %vm371_vm3, %v445_v61 }
 0x6ed   :  { %1954 = vmatpush3.bf16.xpose.msra.mxu1 %v502_v62  ;;  %1955 = vmatprep.mubr.msk.bf16.mxu1 %vm2241_vm2, %v2240_v0 }
 0x6ee   :  { %1959 = vmatprep.subr.bf16.mxu1 %v2240_v0 }
 0x6f4   :  { %1956 = vmatmul.mubr.msk.bf16.vlgmr.msra.gmra.mrb[12].mxu1 %vm371_vm3, %v495_v63 }
 0x6f5   :  { %1961 = vmatprep.mubr.msk.bf16.mxu1 %vm2241_vm2, %v2240_v0 }
 0x7bf   :  { %v486_v1 = vpop.f32.mrb[8].mxu1 }
 0x7c0   :  { %v1951_v2 = vpop.f32.mrb[9].mxu1 }
 0x7c1   :  { %v489_v3 = vpop.f32.mrb[10].mxu1 }
 0x7c2   :  { %v493_v4 = vpack.c.bf16 %v489_v3, %v486_v1  ;;  %v1952_v5 = vpop.f32.mrb[11].mxu1 }
 0x7c7   :  { %v538_v6 = vpop.f32.mrb[12].mxu1 }
 0x7c8   :  { %v545_v7 = vmul.f32 0.25, %v538_v6  ;;  %v1957_v8 = vpop.f32.mrb[13].mxu1 }
 0x7c9   :  { %v541_v9 = vpop.f32.mrb[14].mxu1  ;;  %v2116_v8 = vld [vmem:[%s2731_s4 + $0x8] sm:$0xff]  }
 0x7ca   :  { %v546_v10 = vmul.f32 0.25, %v541_v9  ;;  %v1958_v11 = vpop.f32.mrb[15].mxu1  ;;  %v547_v12 = vadd.f32 %v545_v7, %v2403_v30  ;;  %v2115_v7 = vld [vmem:[%s2731_s4] sm:$0xff]  }
 0x7cc   :  { %v549_v13 = vsel %vm371_vm3, %v547_v12, -inf  ;;  %v548_v14 = vadd.f32 %v546_v10, %v2408_v34 }
 0x7cd   :  { %550 = vmax.xlane.f32.xlu0 %v549_v13 }
 0x7ce   :  { %v552_v15 = vsel %vm371_vm3, %v548_v14, -inf }
 0x7cf   :  { %553 = vmax.xlane.f32.xlu1 %v552_v15 }
 0x85a   :  { %v551_v16 = vpop.xlane.xlu0 %550 }
 0x85b   :  { %v555_v17 = vsub.f32 %v547_v12, %v551_v16 }
 0x85c   :  { %v554_v18 = vpop.xlane.xlu1 %553 }
 0x85d   :  { %v557_v19 = vmul.f32 1.442695, %v555_v17  ;;  %v556_v20 = vsub.f32 %v548_v14, %v554_v18  ;;  %v1796_v17 = vld [vmem:[%s2733_s6 + $0x18] ss:$0 sm:$0xff] }
 0x85f   :  { %2155 = vpow2.f32 %v557_v19  ;;  %v559_v21 = vmul.f32 1.442695, %v556_v20 }
 0x861   :  { %2157 = vpow2.f32 %v559_v21  ;;  %v1797_v21 = vld [vmem:[%s2733_s6 + $0x19] ss:$0 sm:$0xff] }
 0x869   :  { %v2156_v22 = vpop.eup %2155 }
 0x86a   :  { %v561_v23 = vsel %vm371_vm3, %v2156_v22, 0.0 }
 0x86b   :  { %v2158_v24 = vpop.eup %2157  ;;  %562 = vadd.xlane.f32.xlu0 %v561_v23 }
 0x86c   :  { %v564_v25 = vsel %vm371_vm3, %v2158_v24, 0.0 }
 0x86f   :  { %565 = vadd.xlane.f32.xlu0 %v564_v25 }
 0x885   :  { %572 = vrot.lane.b32.xlu0 %v2386_v26, %s2246_s30 }
 0x8f8   :  { %v563_v27 = vpop.xlane.xlu0 %562 }
 0x8f9   :  { %2159 = vrcp.f32 %v563_v27  ;;  %v2117_v27 = vld [vmem:[%s2732_s5] sm:$0xff]  }
 0x8fa   :  { %1986 = vmatpush3.bf16.msra.mxu0 %v2117_v27 }
 0x8fb   :  { %1987 = vmatprep.subr.bf16.mxu0 %v2240_v0 }
 0x8fc   :  { %v566_v28 = vpop.xlane.xlu0 %565 }
 0x8fd   :  { %2161 = vrcp.f32 %v566_v28  ;;  %v2118_v28 = vld [vmem:[%s2732_s5 + $0x8] sm:$0xff]  }
 0x8fe   :  { %1988 = vmatpush3.bf16.msra.mxu0 %v2118_v28 }
 0x8ff   :  { %1989 = vmatprep.subr.bf16.mxu0 %v2240_v0 }
 0x900   :  { %v573_v29 = vpop.permute.xlu0 %572 }
 0x901   :  { %1960 = vmatpush3.bf16.msra.mxu1 %v573_v29  ;;  %v2119_v29 = vld [vmem:[%s2732_s5 + $0x10] sm:$0xff]  }
 0x902   :  { %1965 = vmatprep.subr.bf16.mxu1 %v2240_v0  ;;  %1990 = vmatpush3.bf16.msra.mxu0 %v2119_v29  ;;  %v1842_v29 = vld [vmem:[%s2733_s6 + $0x1d] ss:$0 sm:$0xff] }
 0x903   :  { %v2160_v31 = vpop.eup %2159  ;;  %1991 = vmatprep.subr.bf16.mxu0 %v2240_v0 }
 0x904   :  { %v569_v33 = vmul.f32 %v2160_v31, %v2156_v22  ;;  %v2120_v31 = vld [vmem:[%s2732_s5 + $0x18] sm:$0xff]  }
 0x906   :  { %1992 = vmatpush3.bf16.msra.mxu0 %v2120_v31 }
 0x907   :  { %v2162_v32 = vpop.eup %2161  ;;  %1993 = vmatprep.subr.bf16.mxu0 %v2240_v0 }
 0x908   :  { %v570_v35 = vmul.f32 %v2162_v32, %v2158_v24  ;;  %v2121_v32 = vld [vmem:[%s2732_s5 + $0x20] sm:$0xff]  }
 0x90a   :  { %v571_v37 = vpack.c.bf16 %v570_v35, %v569_v33  ;;  %1994 = vmatpush3.bf16.msra.mxu0 %v2121_v32  ;;  %v2122_v33 = vld [vmem:[%s2732_s5 + $0x28] sm:$0xff]   ;;  %v2123_v35 = vld [vmem:[%s2732_s5 + $0x30] sm:$0xff]  }
 0x90b   :  { %1995 = vmatprep.subr.bf16.mxu0 %v2240_v0 }
 0x90c   :  { %1962 = vmatmul.mubr.msk.bf16.vlgmr.msra.gmra.mrb[16].mxu1 %vm371_vm3, %v571_v37  ;;  %v1798_v37 = vld [vmem:[%s2733_s6 + $0x1a] ss:$0 sm:$0xff] }
 0x90d   :  { %1966 = vmatpush3.bf16.msra.mxu1 %v2113_v36  ;;  %1967 = vmatprep.mubr.msk.bf16.mxu1 %vm2241_vm2, %v2240_v0  ;;  %v2124_v36 = vld [vmem:[%s2732_s5 + $0x38] sm:$0xff]  }
 0x90e   :  { %1971 = vmatprep.subr.bf16.mxu1 %v2240_v0  ;;  %1996 = vmatpush3.bf16.msra.mxu0 %v2122_v33 }
 0x90f   :  { %1997 = vmatprep.subr.bf16.mxu0 %v2240_v0 }
 0x912   :  { %1998 = vmatpush3.bf16.msra.mxu0 %v2123_v35 }
 0x913   :  { %1999 = vmatprep.subr.bf16.mxu0 %v2240_v0 }
 0x916   :  { %2000 = vmatpush3.bf16.msra.mxu0 %v2124_v36  ;;  %v1843_v36 = vld [vmem:[%s2733_s6 + $0x1e] ss:$0 sm:$0xff] }
 0x917   :  { %2031 = vmatprep.subr.bf16.mxu0 %v2240_v0 }
 0x9df   :  { %v612_v26 = vpop.f32.mrb[16].mxu1 }
 0x9e0   :  { %v1963_v38 = vpop.f32.mrb[17].mxu1 }
 0x9e1   :  { %v615_v39 = vpop.f32.mrb[18].mxu1 }
 0x9e2   :  { %v619_v41 = vpack.c.bf16 %v615_v39, %v612_v26  ;;  %v1964_v42 = vpop.f32.mrb[19].mxu1 }
 0x9e4   :  { %1968 = vmatmul.mubr.msk.bf16.vlgmr.msra.gmra.mrb[20].mxu1 %vm371_vm3, %v619_v41 }
 0x9e5   :  { %1972 = vmatpush3.bf16.msra.mxu1 %v2114_v40  ;;  %1973 = vmatprep.mubr.msk.bf16.mxu1 %vm2241_vm2, %v2240_v0 }
 0x9e6   :  { %1977 = vmatprep.subr.bf16.mxu1 %v2240_v0 }
 0x9ec   :  { %1974 = vmatmul.mubr.msk.bf16.vlgmr.msra.gmra.mrb[24].mxu1 %vm371_vm3, %v493_v4 }
 0x9ed   :  { %1981 = vmatprep.mubr.msk.bf16.mxu1 %vm2241_vm2, %v2240_v0  ;;  %1978 = vmatpush3.bf16.msra.mxu1 %v2115_v7 }
 0x9ee   :  { %1979 = vmatprep.subr.bf16.mxu1 %v2240_v0 }
 0x9f1   :  { %1980 = vmatpush3.bf16.msra.mxu1 %v2116_v8 }
 0x9f2   :  { %2005 = vmatprep.subr.bf16.mxu1 %v2240_v0 }
 0xab7   :  { %v663_v43 = vpop.f32.mrb[20].mxu1 }
 0xab8   :  { %v1969_v44 = vpop.f32.mrb[21].mxu1 }
 0xab9   :  { %v666_v45 = vpop.f32.mrb[22].mxu1 }
 0xaba   :  { %v1970_v46 = vpop.f32.mrb[23].mxu1 }
 0xabf   :  { %v713_v48 = vpop.f32.mrb[24].mxu1 }
 0xac0   :  { %v714_v49 = vadd.f32 %v713_v48, %v663_v43  ;;  %v1975_v50 = vpop.f32.mrb[25].mxu1 }
 0xac1   :  { %v716_v53 = vpop.f32.mrb[26].mxu1 }
 0xac2   :  { %v720_v54 = vadd.f32 %v714_v49, %v2348_v47  ;;  %v717_v55 = vadd.f32 %v716_v53, %v666_v45  ;;  %v1976_v56 = vpop.f32.mrb[27].mxu1 }
 0xac4   :  { %v2457_v57 = vadd.f32 %v1795_v52, %v720_v54  ;;  %v721_v58 = vadd.f32 %v717_v55, %v2352_v51 }
 0xac6   :  { %v2460_v59 = vadd.f32 %v1795_v52, %v721_v58  ;;  %v728_v60 = vsel %vm192_vm1, %v2457_v57, 0.0 }
 0xac7   :  { %729 = vadd.xlane.f32.xlu1 %v728_v60  ;;  %v1804_v60 = vld [vmem:[%s2733_s6 + $0x1b] ss:$0 sm:$0xff] }
 0xac8   :  { %v731_v61 = vsel %vm192_vm1, %v2460_v59, 0.0 }
 0xacb   :  { %732 = vadd.xlane.f32.xlu1 %v731_v61 }
 0xb54   :  { %v730_v62 = vpop.xlane.xlu1 %729 }
 0xb55   :  { %v734_v63 = vmul.f32 0.03125, %v730_v62 }
 0xb57   :  { %v736_v47 = vsub.f32 %v2457_v57, %v734_v63 }
 0xb58   :  { %v733_v1 = vpop.xlane.xlu1 %732 }
 0xb59   :  { %v735_v2 = vmul.f32 0.03125, %v733_v1  ;;  %v738_v3 = vmul.f32 %v736_v47, %v736_v47 }
 0xb5b   :  { %v737_v4 = vsub.f32 %v2460_v59, %v735_v2  ;;  %v740_v51 = vsel %vm192_vm1, %v738_v3, 0.0 }
 0xb5c   :  { %741 = vadd.xlane.f32.xlu1 %v740_v51 }
 0xb5d   :  { %v739_v5 = vmul.f32 %v737_v4, %v737_v4 }
 0xb5f   :  { %v743_v6 = vsel %vm192_vm1, %v739_v5, 0.0 }
 0xb60   :  { %744 = vadd.xlane.f32.xlu1 %v743_v6 }
 0xbe9   :  { %v742_v9 = vpop.xlane.xlu1 %741 }
 0xbea   :  { %v746_v10 = vmul.f32 0.03125, %v742_v9 }
 0xbec   :  { %v748_v11 = vadd.f32 1e-05, %v746_v10 }
 0xbed   :  { %v745_v12 = vpop.xlane.xlu1 %744 }
 0xbee   :  { %2163 = vrsqrt.f32 %v748_v11  ;;  %v747_v13 = vmul.f32 0.03125, %v745_v12 }
 0xbf0   :  { %v749_v14 = vadd.f32 1e-05, %v747_v13 }
 0xbf2   :  { %2165 = vrsqrt.f32 %v749_v14  ;;  %v2125_v14 = vld [vmem:[%s2729_s2 + $0x10] sm:$0xff]  }
 0xbf8   :  { %v2164_v15 = vpop.eup %2163 }
 0xbf9   :  { %v752_v16 = vmul.f32 %v2164_v15, %v736_v47  ;;  %v2126_v15 = vld [vmem:[%s2729_s2 + $0x18] sm:$0xff]  }
 0xbfb   :  { %v758_v19 = vmul.f32 %v1796_v17, %v752_v16 }
 0xbfc   :  { %v2166_v18 = vpop.eup %2165 }
 0xbfd   :  { %v753_v20 = vmul.f32 %v2166_v18, %v737_v4  ;;  %v764_v23 = vadd.f32 %v1797_v21, %v758_v19 }
 0xbff   :  { %v759_v22 = vmul.f32 %v1796_v17, %v753_v20 }
 0xc01   :  { %v765_v24 = vadd.f32 %v1797_v21, %v759_v22 }
 0xc03   :  { %v766_v25 = vpack.c.bf16 %v765_v24, %v764_v23  ;;  %v1841_v24 = vld [vmem:[%s2733_s6 + $0x1c] ss:$0 sm:$0xff] }
 0xc05   :  { %1982 = vmatmul.mubr.msk.bf16.vlgmr.msra.gmra.mrb[28].mxu1 %vm192_vm1, %v766_v25 }
 0xc06   :  { %2009 = vmatprep.mubr.msk.bf16.mxu1 %vm2241_vm2, %v2240_v0  ;;  %2006 = vmatpush3.bf16.msra.mxu1 %v2125_v14 }
 0xc07   :  { %2007 = vmatprep.subr.bf16.mxu1 %v2240_v0 }
 0xc0a   :  { %2008 = vmatpush3.bf16.msra.mxu1 %v2126_v15 }
 0xc0b   :  { %2013 = vmatprep.subr.bf16.mxu1 %v2240_v0 }
 0xcd8   :  { %v820_v26 = vpop.f32.mrb[28].mxu1 }
 0xcd9   :  { %v821_v38 = vadd.f32 %v1798_v37, %v820_v26  ;;  %v1983_v39 = vpop.f32.mrb[29].mxu1 }
 0xcda   :  { %v823_v40 = vpop.f32.mrb[30].mxu1 }
 0xcdb   :  { %v1802_v41 = vmul.f32 -1.702, %v821_v38  ;;  %v824_v42 = vadd.f32 %v1798_v37, %v823_v40  ;;  %v1984_v43 = vpop.f32.mrb[31].mxu1 }
 0xcdd   :  { %v831_v44 = vmul.f32 1.442695, %v1802_v41  ;;  %v1803_v45 = vmul.f32 -1.702, %v824_v42 }
 0xcdf   :  { %2167 = vpow2.f32 %v831_v44  ;;  %v833_v46 = vmul.f32 1.442695, %v1803_v45 }
 0xce1   :  { %2169 = vpow2.f32 %v833_v46 }
 0xce9   :  { %v2168_v48 = vpop.eup %2167 }
 0xcea   :  { %v835_v49 = vadd.f32 1.0, %v2168_v48 }
 0xceb   :  { %v2170_v50 = vpop.eup %2169 }
 0xcec   :  { %2171 = vrcp.f32 %v835_v49  ;;  %v836_v52 = vadd.f32 1.0, %v2170_v50 }
 0xcee   :  { %2173 = vrcp.f32 %v836_v52 }
 0xcf6   :  { %v2172_v53 = vpop.eup %2171 }
 0xcf7   :  { %v841_v55 = vmul.f32 %v2172_v53, %v821_v38 }
 0xcf8   :  { %v2174_v54 = vpop.eup %2173 }
 0xcf9   :  { %v842_v56 = vmul.f32 %v2174_v54, %v824_v42 }
 0xcfb   :  { %v843_v58 = vpack.c.bf16 %v842_v56, %v841_v55 }
 0xcfd   :  { %2002 = vmatmul.mubr.bf16.vlgmr.msra.gmra.mrb[4].mxu0 %v843_v58 }
 0xcfe   :  { %2033 = vmatprep.mubr.msk.bf16.mxu0 %vm2241_vm2, %v2240_v0 }
 0xdd0   :  { %v930_v61 = vpop.f32.mrb[4].mxu0 }
 0xdd1   :  { %v931_v62 = vadd.f32 %v1804_v60, %v930_v61  ;;  %v2003_v63 = vpop.f32.mrb[5].mxu0 }
 0xdd2   :  { %v933_v47 = vpop.f32.mrb[6].mxu0 }
 0xdd3   :  { %v2528_v1 = vadd.f32 %v931_v62, %v2457_v57  ;;  %v934_v2 = vadd.f32 %v1804_v60, %v933_v47  ;;  %v2004_v3 = vpop.f32.mrb[7].mxu0 }
 0xdd5   :  { %v2531_v4 = vadd.f32 %v934_v2, %v2460_v59  ;;  %v979_v51 = vsel %vm192_vm1, %v2528_v1, 0.0 }
 0xdd6   :  { %980 = vadd.xlane.f32.xlu1 %v979_v51 }
 0xdd7   :  { %v982_v5 = vsel %vm192_vm1, %v2531_v4, 0.0 }
 0xdda   :  { %983 = vadd.xlane.f32.xlu1 %v982_v5 }
 0xe63   :  { %v981_v6 = vpop.xlane.xlu1 %980 }
 0xe64   :  { %v985_v7 = vmul.f32 0.03125, %v981_v6 }
 0xe66   :  { %v987_v8 = vsub.f32 %v2528_v1, %v985_v7 }
 0xe67   :  { %v984_v9 = vpop.xlane.xlu1 %983 }
 0xe68   :  { %v986_v57 = vmul.f32 0.03125, %v984_v9  ;;  %v989_v10 = vmul.f32 %v987_v8, %v987_v8 }
 0xe6a   :  { %v988_v11 = vsub.f32 %v2531_v4, %v986_v57  ;;  %v991_v59 = vsel %vm192_vm1, %v989_v10, 0.0 }
 0xe6b   :  { %992 = vadd.xlane.f32.xlu0 %v991_v59 }
 0xe6c   :  { %v990_v12 = vmul.f32 %v988_v11, %v988_v11 }
 0xe6e   :  { %v994_v13 = vsel %vm192_vm1, %v990_v12, 0.0 }
 0xe6f   :  { %995 = vadd.xlane.f32.xlu1 %v994_v13 }
 0xef8   :  { %v993_v16 = vpop.xlane.xlu0 %992 }
 0xef9   :  { %v997_v17 = vmul.f32 0.03125, %v993_v16 }
 0xefb   :  { %v999_v18 = vadd.f32 1e-05, %v997_v17 }
 0xefc   :  { %v996_v19 = vpop.xlane.xlu1 %995 }
 0xefd   :  { %2175 = vrsqrt.f32 %v999_v18  ;;  %v998_v20 = vmul.f32 0.03125, %v996_v19 }
 0xeff   :  { %v1000_v21 = vadd.f32 1e-05, %v998_v20 }
 0xf01   :  { %2177 = vrsqrt.f32 %v1000_v21 }
 0xf07   :  { %v2176_v22 = vpop.eup %2175 }
 0xf08   :  { %v1003_v23 = vmul.f32 %v2176_v22, %v987_v8 }
 0xf0a   :  { %v1009_v27 = vmul.f32 %v1841_v24, %v1003_v23 }
 0xf0b   :  { %v2178_v25 = vpop.eup %2177 }
 0xf0c   :  { %v1004_v28 = vmul.f32 %v2178_v25, %v988_v11  ;;  %v1015_v32 = vadd.f32 %v1842_v29, %v1009_v27 }
 0xf0e   :  { %v1010_v31 = vmul.f32 %v1841_v24, %v1004_v28 }
 0xf10   :  { %v1016_v33 = vadd.f32 %v1842_v29, %v1010_v31 }
 0xf12   :  { %v1017_v35 = vpack.c.bf16 %v1016_v33, %v1015_v32 }
 0xf14   :  { %2010 = vmatmul.mubr.msk.bf16.vlgmr.msra.gmra.mrb[32].mxu1 %vm192_vm1, %v1017_v35 }
 0xf15   :  { %2015 = vmatprep.mubr.msk.bf16.mxu1 %vm2241_vm2, %v2240_v0 }
 0xfe7   :  { %v1071_v37 = vpop.f32.mrb[32].mxu1 }
 0xfe8   :  { %v2011_v26 = vpop.f32.mrb[33].mxu1  ;;  %v1072_v39 = vadd.f32 %v1843_v36, %v1071_v37 }
 0xfe9   :  { %v1074_v38 = vpop.f32.mrb[34].mxu1 }
 0xfea   :  { %v1075_v40 = vadd.f32 %v1843_v36, %v1074_v38  ;;  %v2012_v41 = vpop.f32.mrb[35].mxu1 }
 0xfec   :  { %v2561_v42 = vpack.c.bf16 %v1075_v40, %v1072_v39 }
 0xfee   :  { %1080 = vrot.lane.b32.xlu1 %v2561_v42, %s2242_s22 }
0x1060   :  { %v1081_v43 = vpop.permute.xlu1 %1080 }
0x1061   :  { %v1086_v44 = vsel %vm371_vm3, %v1081_v43, 0 }
0x1062   :  { %2014 = vmatpush3.bf16.xpose.msra.mxu1 %v1086_v44 }
0x1063   :  { %2019 = vmatprep.subr.bf16.mxu1 %v2240_v0 }
0x1069   :  { %2016 = vmatmul.mubr.msk.bf16.vlgmr.msra.gmra.mrb[36].mxu1 %vm371_vm3, %v2561_v42 }
0x106a   :  { %2021 = vmatprep.mubr.msk.bf16.mxu1 %vm2241_vm2, %v2240_v0 }
0x113c   :  { %v1122_v45 = vpop.f32.mrb[36].mxu1 }
0x113d   :  { %v1129_v46 = vmul.f32 0.25, %v1122_v45  ;;  %v2017_v48 = vpop.f32.mrb[37].mxu1 }
0x113e   :  { %v1125_v49 = vpop.f32.mrb[38].mxu1 }
0x113f   :  { %v1130_v50 = vmul.f32 0.25, %v1125_v49  ;;  %v2018_v52 = vpop.f32.mrb[39].mxu1  ;;  %v1131_v53 = vadd.f32 %v1129_v46, %v2403_v30 }
0x1141   :  { %v1133_v54 = vsel %vm371_vm3, %v1131_v53, -inf  ;;  %v1132_v55 = vadd.f32 %v1130_v50, %v2408_v34 }
0x1142   :  { %1134 = vmax.xlane.f32.xlu1 %v1133_v54 }
0x1143   :  { %v1136_v56 = vsel %vm371_vm3, %v1132_v55, -inf }
0x1144   :  { %1137 = vmax.xlane.f32.xlu0 %v1136_v56 }
0x1153   :  { %1206 = vrot.lane.b32.xlu1 %v2561_v42, %s2243_s23 }
0x11cf   :  { %v1135_v58 = vpop.xlane.xlu1 %1134 }
0x11d0   :  { %v1139_v60 = vsub.f32 %v1131_v53, %v1135_v58 }
0x11d1   :  { %v1138_v61 = vpop.xlane.xlu0 %1137 }
0x11d2   :  { %v1141_v62 = vmul.f32 1.442695, %v1139_v60  ;;  %v1140_v63 = vsub.f32 %v1132_v55, %v1138_v61 }
0x11d3   :  { %v1207_v59 = vpop.permute.xlu1 %1206 }
0x11d4   :  { %2179 = vpow2.f32 %v1141_v62  ;;  %v1143_v47 = vmul.f32 1.442695, %v1140_v63  ;;  %v1212_v13 = vsel %vm371_vm3, %v1207_v59, 0 }
0x11d6   :  { %2181 = vpow2.f32 %v1143_v47 }
0x11de   :  { %v2180_v2 = vpop.eup %2179 }
0x11df   :  { %v1145_v3 = vsel %vm371_vm3, %v2180_v2, 0.0 }
0x11e0   :  { %v2182_v51 = vpop.eup %2181  ;;  %1146 = vadd.xlane.f32.xlu0 %v1145_v3  ;;  %v1855_v3 = vld [vmem:[%s2733_s6 + $0x1f] ss:$0 sm:$0xff] }
0x11e1   :  { %v1148_v5 = vsel %vm371_vm3, %v2182_v51, 0.0 }
0x11e4   :  { %1149 = vadd.xlane.f32.xlu0 %v1148_v5 }
0x11fa   :  { %1156 = vrot.lane.b32.xlu0 %v2561_v42, %s2245_s29 }
0x11fe   :  { %1204 = vrot.lane.b32.xlu0 %v2561_v42, %s2244_s24 }
0x126d   :  { %v1147_v6 = vpop.xlane.xlu0 %1146 }
0x126e   :  { %2183 = vrcp.f32 %v1147_v6 }
0x1271   :  { %v1150_v7 = vpop.xlane.xlu0 %1149 }
0x1272   :  { %2185 = vrcp.f32 %v1150_v7 }
0x1275   :  { %v1157_v8 = vpop.permute.xlu0 %1156 }
0x1276   :  { %2020 = vmatpush3.bf16.msra.mxu1 %v1157_v8 }
0x1277   :  { %2025 = vmatprep.subr.bf16.mxu1 %v2240_v0 }
0x1278   :  { %v2184_v9 = vpop.eup %2183 }
0x1279   :  { %v1153_v10 = vmul.f32 %v2184_v9, %v2180_v2  ;;  %v1205_v14 = vpop.permute.xlu0 %1204 }
0x127c   :  { %v2186_v57 = vpop.eup %2185 }
0x127d   :  { %v1154_v11 = vmul.f32 %v2186_v57, %v2182_v51 }
0x127f   :  { %v1155_v12 = vpack.c.bf16 %v1154_v11, %v1153_v10 }
0x1281   :  { %2022 = vmatmul.mubr.msk.bf16.vlgmr.msra.gmra.mrb[40].mxu1 %vm371_vm3, %v1155_v12 }
0x1282   :  { %2026 = vmatpush3.bf16.xpose.msra.mxu1 %v1212_v13  ;;  %2027 = vmatprep.mubr.msk.bf16.mxu1 %vm2241_vm2, %v2240_v0 }
0x1283   :  { %2037 = vmatprep.subr.bf16.mxu1 %v2240_v0 }
0x1289   :  { %2028 = vmatmul.mubr.msk.bf16.vlgmr.msra.gmra.mrb[44].mxu1 %vm371_vm3, %v1205_v14 }
0x128a   :  { %2039 = vmatprep.mubr.msk.bf16.mxu1 %vm2241_vm2, %v2240_v0 }
0x1354   :  { %v1196_v15 = vpop.f32.mrb[40].mxu1 }
0x1355   :  { %v2023_v16 = vpop.f32.mrb[41].mxu1 }
0x1356   :  { %v1199_v17 = vpop.f32.mrb[42].mxu1 }
0x1357   :  { %v1203_v18 = vpack.c.bf16 %v1199_v17, %v1196_v15  ;;  %v2024_v19 = vpop.f32.mrb[43].mxu1 }
0x1358   :  { %v2129_v19 = vld [vmem:[%s2731_s4 + $0x10] sm:$0xff]  }
0x135c   :  { %v1248_v20 = vpop.f32.mrb[44].mxu1 }
0x135d   :  { %v1255_v21 = vmul.f32 0.25, %v1248_v20  ;;  %v2029_v22 = vpop.f32.mrb[45].mxu1  ;;  %v2130_v20 = vld [vmem:[%s2731_s4 + $0x18] sm:$0xff]  }
0x135e   :  { %v1251_v23 = vpop.f32.mrb[46].mxu1 }
0x135f   :  { %v1256_v24 = vmul.f32 0.25, %v1251_v23  ;;  %v2030_v25 = vpop.f32.mrb[47].mxu1  ;;  %v1257_v27 = vadd.f32 %v1255_v21, %v2403_v30 }
0x1361   :  { %v1259_v28 = vsel %vm371_vm3, %v1257_v27, -inf  ;;  %v1258_v29 = vadd.f32 %v1256_v24, %v2408_v34  ;;  %v2128_v34 = vld [vmem:[%s2730_s3 + $0x18] sm:$0xff]  }
0x1362   :  { %1260 = vmax.xlane.f32.xlu0 %v1259_v28  ;;  %2038 = vmatpush3.bf16.msra.mxu1 %v2128_v34  ;;  %v2133_v34 = vld [vmem:[%s2732_s5 + $0x50] sm:$0xff]  }
0x1363   :  { %v1262_v31 = vsel %vm371_vm3, %v1258_v29, -inf  ;;  %2049 = vmatprep.subr.bf16.mxu1 %v2240_v0 }
0x1364   :  { %1263 = vmax.xlane.f32.xlu1 %v1262_v31  ;;  %v1856_v31 = vld [vmem:[%s2733_s6 + $0x20] ss:$0 sm:$0xff] }
0x13ef   :  { %v1261_v32 = vpop.xlane.xlu0 %1260 }
0x13f0   :  { %v1265_v33 = vsub.f32 %v1257_v27, %v1261_v32 }
0x13f1   :  { %v1264_v35 = vpop.xlane.xlu1 %1263 }
0x13f2   :  { %v1267_v36 = vmul.f32 1.442695, %v1265_v33  ;;  %v1266_v37 = vsub.f32 %v1258_v29, %v1264_v35 }
0x13f4   :  { %2187 = vpow2.f32 %v1267_v36  ;;  %v1269_v26 = vmul.f32 1.442695, %v1266_v37  ;;  %v1857_v36 = vld [vmem:[%s2733_s6 + $0x21] ss:$0 sm:$0xff] }
0x13f6   :  { %2189 = vpow2.f32 %v1269_v26 }
0x13fe   :  { %v2188_v38 = vpop.eup %2187 }
0x13ff   :  { %v1271_v39 = vsel %vm371_vm3, %v2188_v38, 0.0 }
0x1400   :  { %v2190_v30 = vpop.eup %2189  ;;  %1272 = vadd.xlane.f32.xlu0 %v1271_v39 }
0x1401   :  { %v1274_v40 = vsel %vm371_vm3, %v2190_v30, 0.0 }
0x1404   :  { %1275 = vadd.xlane.f32.xlu0 %v1274_v40  ;;  %v2132_v40 = vld [vmem:[%s2732_s5 + $0x48] sm:$0xff]  }
0x141a   :  { %1282 = vrot.lane.b32.xlu0 %v2561_v42, %s2246_s30  ;;  %v2127_v42 = vld [vmem:[%s2730_s3 + $0x10] sm:$0xff]  }
0x148d   :  { %v1273_v41 = vpop.xlane.xlu0 %1272 }
0x148e   :  { %2191 = vrcp.f32 %v1273_v41  ;;  %v2134_v41 = vld [vmem:[%s2732_s5 + $0x58] sm:$0xff]  }
0x1491   :  { %v1276_v43 = vpop.xlane.xlu0 %1275 }
0x1492   :  { %2193 = vrcp.f32 %v1276_v43  ;;  %v2135_v43 = vld [vmem:[%s2732_s5 + $0x60] sm:$0xff]  }
0x1495   :  { %v1283_v44 = vpop.permute.xlu0 %1282 }
0x1496   :  { %2032 = vmatpush3.bf16.msra.mxu0 %v1283_v44  ;;  %v2136_v44 = vld [vmem:[%s2732_s5 + $0x68] sm:$0xff]  }
0x1497   :  { %2043 = vmatprep.subr.bf16.mxu0 %v2240_v0 }
0x1498   :  { %v2192_v45 = vpop.eup %2191 }
0x1499   :  { %v1279_v48 = vmul.f32 %v2192_v45, %v2188_v38  ;;  %v2137_v45 = vld [vmem:[%s2732_s5 + $0x70] sm:$0xff]  }
0x149c   :  { %v2194_v46 = vpop.eup %2193 }
0x149d   :  { %v1280_v49 = vmul.f32 %v2194_v46, %v2190_v30  ;;  %v2131_v30 = vld [vmem:[%s2732_s5 + $0x40] sm:$0xff]   ;;  %v2138_v46 = vld [vmem:[%s2732_s5 + $0x78] sm:$0xff]  }
0x149f   :  { %v1281_v50 = vpack.c.bf16 %v1280_v49, %v1279_v48  ;;  %v1858_v48 = vld [vmem:[%s2733_s6 + $0x22] ss:$0 sm:$0xff] }
0x14a1   :  { %2034 = vmatmul.mubr.msk.bf16.vlgmr.msra.gmra.mrb[8].mxu0 %vm371_vm3, %v1281_v50 }
0x14a2   :  { %2044 = vmatpush3.bf16.msra.mxu0 %v2127_v42  ;;  %2045 = vmatprep.mubr.msk.bf16.mxu0 %vm2241_vm2, %v2240_v0 }
0x14a3   :  { %2057 = vmatprep.subr.bf16.mxu0 %v2240_v0 }
0x14a9   :  { %2046 = vmatmul.mubr.msk.bf16.vlgmr.msra.gmra.mrb[12].mxu0 %vm371_vm3, %v1203_v18 }
0x14aa   :  { %2073 = vmatprep.mubr.msk.bf16.mxu0 %vm2241_vm2, %v2240_v0  ;;  %2058 = vmatpush3.bf16.msra.mxu0 %v2131_v30  ;;  %v1873_v30 = vld [vmem:[%s2733_s6 + $0x12] ss:$0 sm:$0xff] }
0x14ab   :  { %2059 = vmatprep.subr.bf16.mxu0 %v2240_v0 }
0x14ae   :  { %2060 = vmatpush3.bf16.msra.mxu0 %v2132_v40 }
0x14af   :  { %2061 = vmatprep.subr.bf16.mxu0 %v2240_v0 }
0x14b2   :  { %2062 = vmatpush3.bf16.msra.mxu0 %v2133_v34 }
0x14b3   :  { %2063 = vmatprep.subr.bf16.mxu0 %v2240_v0 }
0x14b6   :  { %2064 = vmatpush3.bf16.msra.mxu0 %v2134_v41 }
0x14b7   :  { %2065 = vmatprep.subr.bf16.mxu0 %v2240_v0 }
0x14ba   :  { %2066 = vmatpush3.bf16.msra.mxu0 %v2135_v43 }
0x14bb   :  { %2067 = vmatprep.subr.bf16.mxu0 %v2240_v0 }
0x14be   :  { %2068 = vmatpush3.bf16.msra.mxu0 %v2136_v44 }
0x14bf   :  { %2069 = vmatprep.subr.bf16.mxu0 %v2240_v0 }
0x14c2   :  { %2070 = vmatpush3.bf16.msra.mxu0 %v2137_v45 }
0x14c3   :  { %2071 = vmatprep.subr.bf16.mxu0 %v2240_v0 }
0x14c6   :  { %2072 = vmatpush3.bf16.msra.mxu0 %v2138_v46 }
0x1574   :  { %v1322_v52 = vpop.f32.mrb[8].mxu0 }
0x1575   :  { %v2035_v53 = vpop.f32.mrb[9].mxu0 }
0x1576   :  { %v1325_v54 = vpop.f32.mrb[10].mxu0 }
0x1577   :  { %v1329_v55 = vpack.c.bf16 %v1325_v54, %v1322_v52  ;;  %v2036_v56 = vpop.f32.mrb[11].mxu0 }
0x1579   :  { %2040 = vmatmul.mubr.msk.bf16.vlgmr.msra.gmra.mrb[48].mxu1 %vm371_vm3, %v1329_v55 }
0x157a   :  { %2053 = vmatprep.mubr.msk.bf16.mxu1 %vm2241_vm2, %v2240_v0  ;;  %2050 = vmatpush3.bf16.msra.mxu1 %v2129_v19 }
0x157b   :  { %2051 = vmatprep.subr.bf16.mxu1 %v2240_v0 }
0x157c   :  { %v1423_v58 = vpop.f32.mrb[12].mxu0 }
0x157d   :  { %v2047_v60 = vpop.f32.mrb[13].mxu0 }
0x157e   :  { %v1426_v61 = vpop.f32.mrb[14].mxu0  ;;  %2052 = vmatpush3.bf16.msra.mxu1 %v2130_v20 }
0x157f   :  { %v2048_v62 = vpop.f32.mrb[15].mxu0  ;;  %2077 = vmatprep.subr.bf16.mxu1 %v2240_v0 }
0x164c   :  { %v1373_v63 = vpop.f32.mrb[48].mxu1 }
0x164d   :  { %v1424_v47 = vadd.f32 %v1423_v58, %v1373_v63  ;;  %v2041_v2 = vpop.f32.mrb[49].mxu1 }
0x164e   :  { %v1376_v51 = vpop.f32.mrb[50].mxu1 }
0x164f   :  { %v1430_v5 = vadd.f32 %v1424_v47, %v2528_v1  ;;  %v1427_v6 = vadd.f32 %v1426_v61, %v1376_v51  ;;  %v2042_v7 = vpop.f32.mrb[51].mxu1 }
0x1650   :  { %v1864_v7 = vld [vmem:[%s2733_s6 + $0x23] ss:$0 sm:$0xff] }
0x1651   :  { %v2622_v8 = vadd.f32 %v1855_v3, %v1430_v5  ;;  %v1431_v9 = vadd.f32 %v1427_v6, %v2531_v4 }
0x1653   :  { %v2625_v57 = vadd.f32 %v1855_v3, %v1431_v9  ;;  %v1438_v10 = vsel %vm192_vm1, %v2622_v8, 0.0 }
0x1654   :  { %1439 = vadd.xlane.f32.xlu1 %v1438_v10 }
0x1655   :  { %v1441_v11 = vsel %vm192_vm1, %v2625_v57, 0.0 }
0x1658   :  { %1442 = vadd.xlane.f32.xlu1 %v1441_v11 }
0x16e1   :  { %v1440_v59 = vpop.xlane.xlu1 %1439 }
0x16e2   :  { %v1444_v12 = vmul.f32 0.03125, %v1440_v59 }
0x16e4   :  { %v1446_v1 = vsub.f32 %v2622_v8, %v1444_v12 }
0x16e5   :  { %v1443_v13 = vpop.xlane.xlu1 %1442 }
0x16e6   :  { %v1445_v14 = vmul.f32 0.03125, %v1443_v13  ;;  %v1448_v15 = vmul.f32 %v1446_v1, %v1446_v1 }
0x16e8   :  { %v1447_v16 = vsub.f32 %v2625_v57, %v1445_v14  ;;  %v1450_v4 = vsel %vm192_vm1, %v1448_v15, 0.0 }
0x16e9   :  { %1451 = vadd.xlane.f32.xlu1 %v1450_v4 }
0x16ea   :  { %v1449_v17 = vmul.f32 %v1447_v16, %v1447_v16 }
0x16ec   :  { %v1453_v18 = vsel %vm192_vm1, %v1449_v17, 0.0 }
0x16ed   :  { %1454 = vadd.xlane.f32.xlu1 %v1453_v18 }
0x1776   :  { %v1452_v21 = vpop.xlane.xlu1 %1451 }
0x1777   :  { %v1456_v22 = vmul.f32 0.03125, %v1452_v21 }
0x1779   :  { %v1458_v23 = vadd.f32 1e-05, %v1456_v22 }
0x177a   :  { %v1455_v24 = vpop.xlane.xlu1 %1454 }
0x177b   :  { %2195 = vrsqrt.f32 %v1458_v23  ;;  %v1457_v25 = vmul.f32 0.03125, %v1455_v24 }
0x177d   :  { %v1459_v27 = vadd.f32 1e-05, %v1457_v25  ;;  %v37_v25 = vld [vmem:[%s2733_s6 + $0x3c] sm:$0xff] }
0x177f   :  { %2197 = vrsqrt.f32 %v1459_v27 }
0x1785   :  { %v2196_v28 = vpop.eup %2195 }
0x1786   :  { %v1462_v29 = vmul.f32 %v2196_v28, %v1446_v1  ;;  %v38_v28 = vld [vmem:[%s2733_s6 + $0x44] sm:$0xff] }
0x1788   :  { %v1468_v33 = vmul.f32 %v1856_v31, %v1462_v29  ;;  %v39_v29 = vld [vmem:[%s2733_s6 + $0x4c] sm:$0xff] }
0x1789   :  { %v2198_v32 = vpop.eup %2197 }
0x178a   :  { %v1463_v35 = vmul.f32 %v2198_v32, %v1447_v16  ;;  %v1474_v26 = vadd.f32 %v1857_v36, %v1468_v33 }
0x178c   :  { %v1469_v37 = vmul.f32 %v1856_v31, %v1463_v35  ;;  %v1689_v31 = vpack.c.bf16 %v39_v29, %v38_v28 }
0x178e   :  { %v1475_v38 = vadd.f32 %v1857_v36, %v1469_v37 }
0x1790   :  { %v1476_v39 = vpack.c.bf16 %v1475_v38, %v1474_v26 }
0x1792   :  { %2054 = vmatmul.mubr.msk.bf16.vlgmr.msra.gmra.mrb[52].mxu1 %vm192_vm1, %v1476_v39 }
0x1793   :  { %2081 = vmatprep.mubr.msk.bf16.mxu1 %vm2241_vm2, %v2240_v0 }
0x1865   :  { %v1530_v49 = vpop.f32.mrb[52].mxu1 }
0x1866   :  { %v1531_v42 = vadd.f32 %v1858_v48, %v1530_v49  ;;  %v2055_v50 = vpop.f32.mrb[53].mxu1 }
0x1867   :  { %v1533_v52 = vpop.f32.mrb[54].mxu1 }
0x1868   :  { %v1862_v53 = vmul.f32 -1.702, %v1531_v42  ;;  %v1534_v54 = vadd.f32 %v1858_v48, %v1533_v52  ;;  %v2056_v55 = vpop.f32.mrb[55].mxu1 }
0x186a   :  { %v1541_v56 = vmul.f32 1.442695, %v1862_v53  ;;  %v1863_v58 = vmul.f32 -1.702, %v1534_v54 }
0x186c   :  { %2199 = vpow2.f32 %v1541_v56  ;;  %v1543_v60 = vmul.f32 1.442695, %v1863_v58 }
0x186e   :  { %2201 = vpow2.f32 %v1543_v60 }
0x1876   :  { %v2200_v61 = vpop.eup %2199 }
0x1877   :  { %v1545_v62 = vadd.f32 1.0, %v2200_v61 }
0x1878   :  { %v2202_v63 = vpop.eup %2201 }
0x1879   :  { %2203 = vrcp.f32 %v1545_v62  ;;  %v1546_v47 = vadd.f32 1.0, %v2202_v63 }
0x187b   :  { %2205 = vrcp.f32 %v1546_v47 }
0x1883   :  { %v2204_v2 = vpop.eup %2203 }
0x1884   :  { %v1551_v51 = vmul.f32 %v2204_v2, %v1531_v42 }
0x1885   :  { %v2206_v3 = vpop.eup %2205 }
0x1886   :  { %v1552_v5 = vmul.f32 %v2206_v3, %v1534_v54 }
0x1888   :  { %v1553_v6 = vpack.c.bf16 %v1552_v5, %v1551_v51 }
0x188a   :  { %2074 = vmatmul.mubr.bf16.vlgmr.msra.gmra.mrb[16].mxu0 %v1553_v6 }
0x195d   :  { %v1640_v9 = vpop.f32.mrb[16].mxu0 }
0x195e   :  { %v1641_v10 = vadd.f32 %v1864_v7, %v1640_v9  ;;  %v2075_v11 = vpop.f32.mrb[17].mxu0 }
0x195f   :  { %v1643_v59 = vpop.f32.mrb[18].mxu0 }
0x1960   :  { %v1644_v12 = vadd.f32 %v1864_v7, %v1643_v59  ;;  %v2076_v1 = vpop.f32.mrb[19].mxu0  ;;  %v1647_v13 = vadd.f32 %v1641_v10, %v2622_v8 }
0x1962   :  { %v1649_v14 = vsel %vm192_vm1, %v1647_v13, 0.0  ;;  %v1648_v15 = vadd.f32 %v1644_v12, %v2625_v57  ;;  %v36_v57 = vld [vmem:[%s2733_s6 + $0x34] sm:$0xff] }
0x1963   :  { %1650 = vadd.xlane.f32.xlu1 %v1649_v14  ;;  %v1688_v27 = vpack.c.bf16 %v37_v25, %v36_v57 }
0x1964   :  { %v1652_v16 = vsel %vm192_vm1, %v1648_v15, 0.0 }
0x1965   :  { %1653 = vadd.xlane.f32.xlu0 %v1652_v16  ;;  %2078 = vmatpush3.bf16.msra.mxu1 %v1688_v27 }
0x1966   :  { %2079 = vmatprep.subr.bf16.mxu1 %v2240_v0  ;;  %v1874_v0 = vld [vmem:[%s2733_s6 + $0x13] ss:$0 sm:$0xff]  ;;  %s2247_s6 = smov [#allocation2]  }
0x1967   :  { %s1753_s19 = sshll.u32 %s2247_s6, 4  ;;  %s1754_s19 = int_to_ptr.vmem [resolvable:$true] %s1753_s19 }
0x1968   :  { %s2215_s20 = scalar_lea.vmem %s1754_s19, 256  ;;  %p2220_p1 = scmp.lt.s32.totalorder %s1754_s19, %s1754_s19 }
0x1969   :  { %2080 = vmatpush3.bf16.msra.mxu1 %v1689_v31  ;;  %p2216_p0 = scmp.ne.s32.totalorder %s1754_s19, %s2215_s20  ;;  %p2221_p2 = scmp.lt.s32.totalorder %s2215_s20, %s2215_s20 }
0x196b   :  { %p2222_p3 = por %p2221_p2, %p2220_p1 }
0x196d   :  { %p2223_p4 = pnand %p2222_p3, %p2216_p0 }
0x19f0   :  { %v1651_v4 = vpop.xlane.xlu1 %1650 }
0x19f1   :  { %v1655_v17 = vmul.f32 0.03125, %v1651_v4 }
0x19f2   :  { %v1654_v18 = vpop.xlane.xlu0 %1653 }
0x19f3   :  { %v1657_v19 = vsub.f32 %v1647_v13, %v1655_v17  ;;  %v1656_v20 = vmul.f32 0.03125, %v1654_v18 }
0x19f5   :  { %v1658_v21 = vsub.f32 %v1648_v15, %v1656_v20  ;;  %v1659_v22 = vmul.f32 %v1657_v19, %v1657_v19 }
0x19f7   :  { %v1661_v23 = vsel %vm192_vm1, %v1659_v22, 0.0  ;;  %v1660_v24 = vmul.f32 %v1658_v21, %v1658_v21 }
0x19f8   :  { %1662 = vadd.xlane.f32.xlu1 %v1661_v23 }
0x19f9   :  { %v1664_v8 = vsel %vm192_vm1, %v1660_v24, 0.0 }
0x19fc   :  { %1665 = vadd.xlane.f32.xlu1 %v1664_v8 }
0x1a85   :  { %v1663_v32 = vpop.xlane.xlu1 %1662 }
0x1a86   :  { %v1667_v33 = vmul.f32 0.03125, %v1663_v32 }
0x1a88   :  { %v1669_v35 = vadd.f32 1e-05, %v1667_v33 }
0x1a89   :  { %v1666_v36 = vpop.xlane.xlu1 %1665 }
0x1a8a   :  { %2207 = vrsqrt.f32 %v1669_v35  ;;  %v1668_v37 = vmul.f32 0.03125, %v1666_v36 }
0x1a8c   :  { %v1670_v26 = vadd.f32 1e-05, %v1668_v37 }
0x1a8e   :  { %2209 = vrsqrt.f32 %v1670_v26 }
0x1a94   :  { %v2208_v38 = vpop.eup %2207 }
0x1a95   :  { %v1673_v39 = vmul.f32 %v2208_v38, %v1657_v19 }
0x1a97   :  { %v1679_v34 = vmul.f32 %v1873_v30, %v1673_v39 }
0x1a98   :  { %v2210_v40 = vpop.eup %2209 }
0x1a99   :  { %v1674_v41 = vmul.f32 %v2210_v40, %v1658_v21  ;;  %v1685_v44 = vadd.f32 %v1874_v0, %v1679_v34 }
0x1a9b   :  { %v1680_v43 = vmul.f32 %v1873_v30, %v1674_v41 }
0x1a9d   :  { %v1686_v45 = vadd.f32 %v1874_v0, %v1680_v43 }
0x1a9f   :  { %v1687_v46 = vpack.c.bf16 %v1686_v45, %v1685_v44 }
0x1aa1   :  { %2082 = vmatmul.mubr.msk.bf16.vlgmr.msra.gmra.mrb[56].mxu1 %vm192_vm1, %v1687_v46 }
0x1b74   :  { %v1727_v48 = vpop.f32.mrb[56].mxu1 }
0x1b75   :  { %v2083_v49 = vpop.f32.mrb[57].mxu1  ;;  %v1734_v42 = vmul.f32 %v1727_v48, %v1727_v48 }
0x1b76   :  { %v1730_v50 = vpop.f32.mrb[58].mxu1 }
0x1b77   :  { %1736 = vadd.xlane.f32.xlu1 %v1734_v42  ;;  %v2084_v52 = vpop.f32.mrb[59].mxu1  ;;  %v1735_v53 = vmul.f32 %v1730_v50, %v1730_v50 }
0x1b7b   :  { %1738 = vadd.xlane.f32.xlu1 %v1735_v53 }
0x1c04   :  { %v1737_v54 = vpop.xlane.xlu1 %1736 }
0x1c05   :  { %v1740_v55 = vadd.f32 1e-12, %v1737_v54 }
0x1c07   :  { %2211 = vrsqrt.f32 %v1740_v55 }
0x1c08   :  { %v1739_v56 = vpop.xlane.xlu1 %1738 }
0x1c09   :  { %v1741_v58 = vadd.f32 1e-12, %v1739_v56 }
0x1c0b   :  { %2213 = vrsqrt.f32 %v1741_v58 }
0x1c11   :  { %v2212_v60 = vpop.eup %2211 }
0x1c12   :  { %v1744_v61 = vmul.f32 %v2212_v60, %v1727_v48 }
0x1c14   :  { %1746 = vst [vmem:[#allocation2] sm:$0xff] %v1744_v61 }
0x1c15   :  { %v2214_v62 = vpop.eup %2213 }
0x1c16   :  { %v1745_v63 = vmul.f32 %v2214_v62, %v1730_v50 }
0x1c18   :  { %1747 = vst [vmem:[#allocation2 + $0x8] sm:$0xff] %v1745_v63 }
0x1c19   :  { %2226 = shalt.err (!%p2223_p4)
}
0x1c1a   :  { %s2227_s26 = scalar_lea.hbm %s2734_s7, 256 }
0x1c1b   :  { %p2228_p5 = scmp.ne.s32.totalorder %s2734_s7, %s2227_s26  ;;  %p2231_p6 = scmp.lt.u32.totalorder %s2227_s26, %s2734_s7 }
0x1c1d   :  { %p2233_p7 = pnand %p2231_p6, %p2228_p5 }
0x1c1f   :  { %2236 = shalt.err (!%p2233_p7)
}
0x1c20   :  { %s2248_s9 = smov 128   ;;  %s2249_s0 = smov 8  }
0x1c21   :  { %1759 = dma.vmem_to_hbm [thread:$0]  %s1754_s19, 256, %s2734_s7, [#allocation3], %s2248_s9, %s2248_s9, %s2249_s0  }
0x1c22   :  { %2237 = dma.done.wait [#allocation3], 256  }
0x1c23   :  { %2238 = vsyncadd [#allocation3], 4294967040 }
0x1c24   :  { %1763 = vsyncpa [#allocation3], 1 }

</bundles_post_ra>
